<compile_context>
chip_gen: v7x
topology: tpu7x:2x2x1
jax: 0.10.0
libtpu: 0.0.40
codegen_flags: <defaults>
</compile_context>

<pallas_src>
import math

import jax
import jax.numpy as jnp
from jax.experimental import pallas as pl
from jax.experimental.pallas import tpu as pltpu

# ----------------------------- tiny BERT config -----------------------------
VOCAB = 64
TYPE_VOCAB = 2
MAX_POS = 16
HIDDEN = 32
NUM_HEADS = 2
HEAD_DIM = HIDDEN // NUM_HEADS
INTERMEDIATE = 64
NUM_LAYERS = 2
LN_EPS = 1e-12  # BERT layernorm eps
ATTN_SCALE = 1.0 / math.sqrt(HEAD_DIM)


# ------------------------------ fused kernel --------------------------------
def _layer_norm(x, g, b):
    mean = jnp.mean(x, axis=-1, keepdims=True)
    var = jnp.mean((x - mean) ** 2, axis=-1, keepdims=True)
    return (x - mean) * jax.lax.rsqrt(var + LN_EPS) * g + b


def _gelu(x):
    # TODO(synk): HF BERT default is exact erf-GELU; tanh approximation used here.
    return 0.5 * x * (1.0 + jnp.tanh(0.7978845608028654 * (x + 0.044715 * x * x * x)))


def _encoder_kernel(x_ref, mask_ref, eg_ref, eb_ref,
                    qkv_w_ref, qkv_b_ref, ao_w_ref, ao_b_ref,
                    ln1_g_ref, ln1_b_ref,
                    ff1_w_ref, ff1_b_ref, ff2_w_ref, ff2_b_ref,
                    ln2_g_ref, ln2_b_ref,
                    o_ref):
    f32 = jnp.float32
    bf16 = jnp.bfloat16

    x = x_ref[...].astype(f32)        # [S, H] word+pos+type embedding sum
    mask = mask_ref[...].astype(f32)  # [1, S] additive attention mask

    # Embedding layernorm fused into the same kernel.
    h = _layer_norm(x, eg_ref[...], eb_ref[...])

    for l in range(NUM_LAYERS):        # static unroll; activations never leave VMEM
        h_bf = h.astype(bf16)

        # ---------------- self attention (heads on a leading weight axis) ---
        attn_out = None
        for hd in range(NUM_HEADS):
            q = jnp.dot(h_bf, qkv_w_ref[l, 0, hd],
                        preferred_element_type=f32) + qkv_b_ref[l, 0, hd]   # [S, D]
            k = jnp.dot(h_bf, qkv_w_ref[l, 1, hd],
                        preferred_element_type=f32) + qkv_b_ref[l, 1, hd]   # [S, D]
            v = jnp.dot(h_bf, qkv_w_ref[l, 2, hd],
                        preferred_element_type=f32) + qkv_b_ref[l, 2, hd]   # [S, D]

            # scores = q @ k^T (contract head_dim), f32 accumulation
            s = jax.lax.dot_general(q, k, (((1,), (1,)), ((), ())),
                                    preferred_element_type=f32)             # [S, S]
            s = s * ATTN_SCALE + mask
            s = s - jnp.max(s, axis=-1, keepdims=True)
            p = jnp.exp(s)
            p = p * pl.reciprocal(jnp.sum(p, axis=-1, keepdims=True), approx=True)

            ctx = jnp.dot(p.astype(bf16), v.astype(bf16),
                          preferred_element_type=f32)                       # [S, D]
            # Per-head slice of the output projection, summed over heads
            # (mathematically == concat_h(ctx_h) @ W_o).
            term = jnp.dot(ctx.astype(bf16), ao_w_ref[l, hd],
                           preferred_element_type=f32)                      # [S, H]
            attn_out = term if attn_out is None else attn_out + term
        attn_out = attn_out + ao_b_ref[l]

        # ---------------- residual + layernorm fused -------------------------
        h1 = _layer_norm(attn_out + h, ln1_g_ref[l], ln1_b_ref[l])

        # ---------------- feed-forward + GELU + residual + layernorm ---------
        ff = jnp.dot(h1.astype(bf16), ff1_w_ref[l],
                     preferred_element_type=f32) + ff1_b_ref[l]             # [S, I]
        ff = _gelu(ff)
        ff = jnp.dot(ff.astype(bf16), ff2_w_ref[l],
                     preferred_element_type=f32) + ff2_b_ref[l]             # [S, H]
        h = _layer_norm(ff + h1, ln2_g_ref[l], ln2_b_ref[l])

    o_ref[...] = h.astype(o_ref.dtype)


def _full_block_spec(a):
    nd = a.ndim

    def idx(b):
        return (0,) * nd

    return pl.BlockSpec(a.shape, idx)


def bert_encoder_fused(emb, add_mask, params):
    """Embedding-LN + all encoder layers in a single pallas_call (grid over batch)."""
    B, S, H = emb.shape
    weights = [
        params["emb_ln_g"], params["emb_ln_b"],
        params["qkv_w"], params["qkv_b"],
        params["ao_w"], params["ao_b"],
        params["ln1_g"], params["ln1_b"],
        params["ff1_w"], params["ff1_b"],
        params["ff2_w"], params["ff2_b"],
        params["ln2_g"], params["ln2_b"],
    ]
    in_specs = [
        pl.BlockSpec((None, S, H), lambda b: (b, 0, 0)),   # embeddings  (per batch)
        pl.BlockSpec((None, 1, S), lambda b: (b, 0, 0)),   # additive mask (per batch)
    ] + [_full_block_spec(w) for w in weights]

    return pl.pallas_call(
        _encoder_kernel,
        out_shape=jax.ShapeDtypeStruct((B, S, H), jnp.float32),
        grid=(B,),
        in_specs=in_specs,
        out_specs=pl.BlockSpec((None, S, H), lambda b: (b, 0, 0)),
        compiler_params=pltpu.CompilerParams(dimension_semantics=("parallel",)),
    )(emb, add_mask, *weights)


# ------------------------------- BERT forward --------------------------------
def bert_forward(params, tokens, segments, input_masks):
    """Equivalent of Bert.forward: returns last hidden state [B, S, H]."""
    B, S = tokens.shape
    pos = jnp.arange(S)
    # Embedding gathers are glue (plain JAX); everything else runs in the kernel.
    emb = (params["word_emb"][tokens]
           + params["pos_emb"][pos][None, :, :]
           + params["type_emb"][segments])                                # [B, S, H]
    # HuggingFace-style extended attention mask: (1 - mask) * -10000
    add_mask = ((1.0 - input_masks.astype(jnp.float32)) * -10000.0)[:, None, :]
    return bert_encoder_fused(emb, add_mask, params)


# ------------------------------ parameter init -------------------------------
def init_params(key):
    keys = iter(jax.random.split(key, 8))

    def nrm(shape, dtype=jnp.float32):
        return (0.02 * jax.random.normal(next(keys), shape, jnp.float32)).astype(dtype)

    bf16 = jnp.bfloat16
    f32 = jnp.float32
    L, H, D, I = NUM_LAYERS, HIDDEN, HEAD_DIM, INTERMEDIATE
    return {
        "word_emb": nrm((VOCAB, H)),
        "pos_emb": nrm((MAX_POS, H)),
        "type_emb": nrm((TYPE_VOCAB, H)),
        "emb_ln_g": jnp.ones((1, H), f32),
        "emb_ln_b": jnp.zeros((1, H), f32),
        # Matmul weights stored in bf16 (MXU operands); biases / LN params in f32.
        # Heads live on a leading axis so the kernel only does leading-axis indexing.
        "qkv_w": nrm((L, 3, NUM_HEADS, H, D), bf16),
        "qkv_b": jnp.zeros((L, 3, NUM_HEADS, 1, D), f32),
        "ao_w": nrm((L, NUM_HEADS, D, H), bf16),
        "ao_b": jnp.zeros((L, 1, H), f32),
        "ln1_g": jnp.ones((L, 1, H), f32),
        "ln1_b": jnp.zeros((L, 1, H), f32),
        "ff1_w": nrm((L, H, I), bf16),
        "ff1_b": jnp.zeros((L, 1, I), f32),
        "ff2_w": nrm((L, I, H), bf16),
        "ff2_b": jnp.zeros((L, 1, H), f32),
        "ln2_g": jnp.ones((L, 1, H), f32),
        "ln2_b": jnp.zeros((L, 1, H), f32),
    }


# ----------------------------------- main ------------------------------------
if __name__ == "__main__":
    key = jax.random.PRNGKey(0)
    pkey, tkey = jax.random.split(key)
    params = init_params(pkey)

    B, S = 2, 8
    tokens = jax.random.randint(tkey, (B, S), 0, VOCAB, dtype=jnp.int32)
    segments = jnp.zeros((B, S), dtype=jnp.int32)
    lengths = jnp.array([8, 5], dtype=jnp.int32)
    input_masks = (jnp.arange(S)[None, :] < lengths[:, None]).astype(jnp.int32)

    fwd = jax.jit(bert_forward)
    out = jax.block_until_ready(fwd(params, tokens, segments, input_masks))
    assert out.shape == (B, S, HIDDEN) and out.dtype == jnp.float32
    print("KERNEL_OK")
</pallas_src>

<mosaic_0001>
module attributes {stable_mosaic.version = 11 : i64} {
  func.func @_encoder_kernel(%arg0: i32, %arg1: memref<1x8x32xf32, #tpu.memory_space<vmem>>, %arg2: memref<1x1x8xf32, #tpu.memory_space<vmem>>, %arg3: memref<1x32xf32, #tpu.memory_space<vmem>>, %arg4: memref<1x32xf32, #tpu.memory_space<vmem>>, %arg5: memref<2x3x2x32x16xbf16, #tpu.memory_space<vmem>>, %arg6: memref<2x3x2x1x16xf32, #tpu.memory_space<vmem>>, %arg7: memref<2x2x16x32xbf16, #tpu.memory_space<vmem>>, %arg8: memref<2x1x32xf32, #tpu.memory_space<vmem>>, %arg9: memref<2x1x32xf32, #tpu.memory_space<vmem>>, %arg10: memref<2x1x32xf32, #tpu.memory_space<vmem>>, %arg11: memref<2x32x64xbf16, #tpu.memory_space<vmem>>, %arg12: memref<2x1x64xf32, #tpu.memory_space<vmem>>, %arg13: memref<2x64x32xbf16, #tpu.memory_space<vmem>>, %arg14: memref<2x1x32xf32, #tpu.memory_space<vmem>>, %arg15: memref<2x1x32xf32, #tpu.memory_space<vmem>>, %arg16: memref<2x1x32xf32, #tpu.memory_space<vmem>>, %arg17: memref<1x8x32xf32, #tpu.memory_space<vmem>>) attributes {dimension_semantics = [#tpu.dimension_semantics<parallel>], iteration_bounds = array<i64: 2>, scalar_prefetch = 0 : i64, scratch_operands = 0 : i64, tpu.core_type = #tpu.core_type<tc>, window_params = [{transform_indices = @transform_0, window_bounds = array<i64: 1, 8, 32>}, {transform_indices = @transform_1, window_bounds = array<i64: 1, 1, 8>}, {pipeline_mode = #tpu.pipeline_mode<synchronous>, transform_indices = @transform_2, window_bounds = array<i64: 1, 32>}, {pipeline_mode = #tpu.pipeline_mode<synchronous>, transform_indices = @transform_3, window_bounds = array<i64: 1, 32>}, {pipeline_mode = #tpu.pipeline_mode<synchronous>, transform_indices = @transform_4, window_bounds = array<i64: 2, 3, 2, 32, 16>}, {pipeline_mode = #tpu.pipeline_mode<synchronous>, transform_indices = @transform_5, window_bounds = array<i64: 2, 3, 2, 1, 16>}, {pipeline_mode = #tpu.pipeline_mode<synchronous>, transform_indices = @transform_6, window_bounds = array<i64: 2, 2, 16, 32>}, {pipeline_mode = #tpu.pipeline_mode<synchronous>, transform_indices = @transform_7, window_bounds = array<i64: 2, 1, 32>}, {pipeline_mode = #tpu.pipeline_mode<synchronous>, transform_indices = @transform_8, window_bounds = array<i64: 2, 1, 32>}, {pipeline_mode = #tpu.pipeline_mode<synchronous>, transform_indices = @transform_9, window_bounds = array<i64: 2, 1, 32>}, {pipeline_mode = #tpu.pipeline_mode<synchronous>, transform_indices = @transform_10, window_bounds = array<i64: 2, 32, 64>}, {pipeline_mode = #tpu.pipeline_mode<synchronous>, transform_indices = @transform_11, window_bounds = array<i64: 2, 1, 64>}, {pipeline_mode = #tpu.pipeline_mode<synchronous>, transform_indices = @transform_12, window_bounds = array<i64: 2, 64, 32>}, {pipeline_mode = #tpu.pipeline_mode<synchronous>, transform_indices = @transform_13, window_bounds = array<i64: 2, 1, 32>}, {pipeline_mode = #tpu.pipeline_mode<synchronous>, transform_indices = @transform_14, window_bounds = array<i64: 2, 1, 32>}, {pipeline_mode = #tpu.pipeline_mode<synchronous>, transform_indices = @transform_15, window_bounds = array<i64: 2, 1, 32>}, {transform_indices = @transform_16, window_bounds = array<i64: 1, 8, 32>}]} {
    %c0 = arith.constant 0 : index
    %c0_0 = arith.constant 0 : index
    %c0_1 = arith.constant 0 : index
    %0 = vector.load %arg1[%c0, %c0_0, %c0_1] : memref<1x8x32xf32, #tpu.memory_space<vmem>>, vector<1x8x32xf32>
    %1 = vector.shape_cast %0 : vector<1x8x32xf32> to vector<8x32xf32>
    %c0_2 = arith.constant 0 : index
    %c0_3 = arith.constant 0 : index
    %c0_4 = arith.constant 0 : index
    %2 = vector.load %arg2[%c0_2, %c0_3, %c0_4] : memref<1x1x8xf32, #tpu.memory_space<vmem>>, vector<1x1x8xf32>
    %3 = vector.shape_cast %2 : vector<1x1x8xf32> to vector<1x8xf32>
    %c0_5 = arith.constant 0 : index
    %c0_6 = arith.constant 0 : index
    %4 = vector.load %arg3[%c0_5, %c0_6] : memref<1x32xf32, #tpu.memory_space<vmem>>, vector<1x32xf32>
    %c0_7 = arith.constant 0 : index
    %c0_8 = arith.constant 0 : index
    %5 = vector.load %arg4[%c0_7, %c0_8] : memref<1x32xf32, #tpu.memory_space<vmem>>, vector<1x32xf32>
    %cst = arith.constant dense<0.000000e+00> : vector<8xf32>
    %6 = vector.multi_reduction <add>, %1, %cst [1] : vector<8x32xf32> to vector<8xf32>
    %7 = vector.shape_cast %6 : vector<8xf32> to vector<8x1xf32>
    %cst_9 = arith.constant 3.200000e+01 : f32
    %8 = vector.broadcast %cst_9 : f32 to vector<8x1xf32>
    %9 = arith.divf %7, %8 : vector<8x1xf32>
    %10 = vector.broadcast %9 : vector<8x1xf32> to vector<8x32xf32>
    %11 = arith.subf %1, %10 : vector<8x32xf32>
    %12 = arith.mulf %11, %11 : vector<8x32xf32>
    %cst_10 = arith.constant dense<0.000000e+00> : vector<8xf32>
    %13 = vector.multi_reduction <add>, %12, %cst_10 [1] : vector<8x32xf32> to vector<8xf32>
    %14 = vector.shape_cast %13 : vector<8xf32> to vector<8x1xf32>
    %cst_11 = arith.constant 3.200000e+01 : f32
    %15 = vector.broadcast %cst_11 : f32 to vector<8x1xf32>
    %16 = arith.divf %14, %15 : vector<8x1xf32>
    %17 = vector.broadcast %9 : vector<8x1xf32> to vector<8x32xf32>
    %18 = arith.subf %1, %17 : vector<8x32xf32>
    %cst_12 = arith.constant 9.99999996E-13 : f32
    %19 = vector.broadcast %cst_12 : f32 to vector<8x1xf32>
    %20 = arith.addf %16, %19 : vector<8x1xf32>
    %21 = math.rsqrt %20 : vector<8x1xf32>
    %22 = vector.broadcast %21 : vector<8x1xf32> to vector<8x32xf32>
    %23 = arith.mulf %18, %22 : vector<8x32xf32>
    %24 = vector.broadcast %4 : vector<1x32xf32> to vector<8x32xf32>
    %25 = arith.mulf %23, %24 : vector<8x32xf32>
    %26 = vector.broadcast %5 : vector<1x32xf32> to vector<8x32xf32>
    %27 = arith.addf %25, %26 : vector<8x32xf32>
    %28 = arith.truncf %27 : vector<8x32xf32> to vector<8x32xbf16>
    %c0_13 = arith.constant 0 : index
    %c0_14 = arith.constant 0 : index
    %c0_15 = arith.constant 0 : index
    %c0_16 = arith.constant 0 : index
    %c0_17 = arith.constant 0 : index
    %29 = vector.load %arg5[%c0_13, %c0_14, %c0_15, %c0_16, %c0_17] : memref<2x3x2x32x16xbf16, #tpu.memory_space<vmem>>, vector<1x1x1x32x16xbf16>
    %30 = vector.shape_cast %29 : vector<1x1x1x32x16xbf16> to vector<32x16xbf16>
    %cst_18 = arith.constant dense<0.000000e+00> : vector<8x16xf32>
    %31 = tpu.matmul %28, %30, %cst_18 {dimension_numbers = #tpu.dot_dimension_numbers<[1], [0], [0], [1], [0, 0, 1, 1], [], []>} : vector<8x32xbf16>, vector<32x16xbf16>, vector<8x16xf32> -> vector<8x16xf32>
    %c0_19 = arith.constant 0 : index
    %c0_20 = arith.constant 0 : index
    %c0_21 = arith.constant 0 : index
    %c0_22 = arith.constant 0 : index
    %c0_23 = arith.constant 0 : index
    %32 = vector.load %arg6[%c0_19, %c0_20, %c0_21, %c0_22, %c0_23] : memref<2x3x2x1x16xf32, #tpu.memory_space<vmem>>, vector<1x1x1x1x16xf32>
    %33 = vector.shape_cast %32 : vector<1x1x1x1x16xf32> to vector<1x16xf32>
    %34 = vector.broadcast %33 : vector<1x16xf32> to vector<8x16xf32>
    %35 = arith.addf %31, %34 : vector<8x16xf32>
    %c0_24 = arith.constant 0 : index
    %c1 = arith.constant 1 : index
    %c0_25 = arith.constant 0 : index
    %c0_26 = arith.constant 0 : index
    %c0_27 = arith.constant 0 : index
    %36 = vector.load %arg5[%c0_24, %c1, %c0_25, %c0_26, %c0_27] : memref<2x3x2x32x16xbf16, #tpu.memory_space<vmem>>, vector<1x1x1x32x16xbf16>
    %37 = vector.shape_cast %36 : vector<1x1x1x32x16xbf16> to vector<32x16xbf16>
    %cst_28 = arith.constant dense<0.000000e+00> : vector<8x16xf32>
    %38 = tpu.matmul %28, %37, %cst_28 {dimension_numbers = #tpu.dot_dimension_numbers<[1], [0], [0], [1], [0, 0, 1, 1], [], []>} : vector<8x32xbf16>, vector<32x16xbf16>, vector<8x16xf32> -> vector<8x16xf32>
    %c0_29 = arith.constant 0 : index
    %c1_30 = arith.constant 1 : index
    %c0_31 = arith.constant 0 : index
    %c0_32 = arith.constant 0 : index
    %c0_33 = arith.constant 0 : index
    %39 = vector.load %arg6[%c0_29, %c1_30, %c0_31, %c0_32, %c0_33] : memref<2x3x2x1x16xf32, #tpu.memory_space<vmem>>, vector<1x1x1x1x16xf32>
    %40 = vector.shape_cast %39 : vector<1x1x1x1x16xf32> to vector<1x16xf32>
    %41 = vector.broadcast %40 : vector<1x16xf32> to vector<8x16xf32>
    %42 = arith.addf %38, %41 : vector<8x16xf32>
    %c0_34 = arith.constant 0 : index
    %c2 = arith.constant 2 : index
    %c0_35 = arith.constant 0 : index
    %c0_36 = arith.constant 0 : index
    %c0_37 = arith.constant 0 : index
    %43 = vector.load %arg5[%c0_34, %c2, %c0_35, %c0_36, %c0_37] : memref<2x3x2x32x16xbf16, #tpu.memory_space<vmem>>, vector<1x1x1x32x16xbf16>
    %44 = vector.shape_cast %43 : vector<1x1x1x32x16xbf16> to vector<32x16xbf16>
    %cst_38 = arith.constant dense<0.000000e+00> : vector<8x16xf32>
    %45 = tpu.matmul %28, %44, %cst_38 {dimension_numbers = #tpu.dot_dimension_numbers<[1], [0], [0], [1], [0, 0, 1, 1], [], []>} : vector<8x32xbf16>, vector<32x16xbf16>, vector<8x16xf32> -> vector<8x16xf32>
    %c0_39 = arith.constant 0 : index
    %c2_40 = arith.constant 2 : index
    %c0_41 = arith.constant 0 : index
    %c0_42 = arith.constant 0 : index
    %c0_43 = arith.constant 0 : index
    %46 = vector.load %arg6[%c0_39, %c2_40, %c0_41, %c0_42, %c0_43] : memref<2x3x2x1x16xf32, #tpu.memory_space<vmem>>, vector<1x1x1x1x16xf32>
    %47 = vector.shape_cast %46 : vector<1x1x1x1x16xf32> to vector<1x16xf32>
    %48 = vector.broadcast %47 : vector<1x16xf32> to vector<8x16xf32>
    %49 = arith.addf %45, %48 : vector<8x16xf32>
    %cst_44 = arith.constant dense<0.000000e+00> : vector<8x8xf32>
    %50 = tpu.matmul %35, %42, %cst_44 {dimension_numbers = #tpu.dot_dimension_numbers<[1], [1], [0], [0], [0, 0, 1, 0], [], []>} : vector<8x16xf32>, vector<8x16xf32>, vector<8x8xf32> -> vector<8x8xf32>
    %cst_45 = arith.constant 2.500000e-01 : f32
    %51 = vector.broadcast %cst_45 : f32 to vector<8x8xf32>
    %52 = arith.mulf %50, %51 : vector<8x8xf32>
    %53 = vector.broadcast %3 : vector<1x8xf32> to vector<8x8xf32>
    %54 = arith.addf %52, %53 : vector<8x8xf32>
    %cst_46 = arith.constant dense<0xFF800000> : vector<8xf32>
    %55 = vector.multi_reduction <maximumf>, %54, %cst_46 [1] : vector<8x8xf32> to vector<8xf32>
    %56 = vector.shape_cast %55 : vector<8xf32> to vector<8x1xf32>
    %57 = vector.broadcast %56 : vector<8x1xf32> to vector<8x8xf32>
    %58 = arith.subf %54, %57 : vector<8x8xf32>
    %59 = math.exp %58 : vector<8x8xf32>
    %cst_47 = arith.constant dense<0.000000e+00> : vector<8xf32>
    %60 = vector.multi_reduction <add>, %59, %cst_47 [1] : vector<8x8xf32> to vector<8xf32>
    %61 = vector.shape_cast %60 : vector<8xf32> to vector<8x1xf32>
    %62 = tpu.reciprocal %61 {approx = true} : vector<8x1xf32> -> vector<8x1xf32>
    %63 = vector.broadcast %62 : vector<8x1xf32> to vector<8x8xf32>
    %64 = arith.mulf %59, %63 : vector<8x8xf32>
    %65 = arith.truncf %64 : vector<8x8xf32> to vector<8x8xbf16>
    %66 = arith.truncf %49 : vector<8x16xf32> to vector<8x16xbf16>
    %cst_48 = arith.constant dense<0.000000e+00> : vector<8x16xf32>
    %67 = tpu.matmul %65, %66, %cst_48 {dimension_numbers = #tpu.dot_dimension_numbers<[1], [0], [0], [1], [0, 0, 1, 1], [], []>} : vector<8x8xbf16>, vector<8x16xbf16>, vector<8x16xf32> -> vector<8x16xf32>
    %68 = arith.truncf %67 : vector<8x16xf32> to vector<8x16xbf16>
    %c0_49 = arith.constant 0 : index
    %c0_50 = arith.constant 0 : index
    %c0_51 = arith.constant 0 : index
    %c0_52 = arith.constant 0 : index
    %69 = vector.load %arg7[%c0_49, %c0_50, %c0_51, %c0_52] : memref<2x2x16x32xbf16, #tpu.memory_space<vmem>>, vector<1x1x16x32xbf16>
    %70 = vector.shape_cast %69 : vector<1x1x16x32xbf16> to vector<16x32xbf16>
    %cst_53 = arith.constant dense<0.000000e+00> : vector<8x32xf32>
    %71 = tpu.matmul %68, %70, %cst_53 {dimension_numbers = #tpu.dot_dimension_numbers<[1], [0], [0], [1], [0, 0, 1, 1], [], []>} : vector<8x16xbf16>, vector<16x32xbf16>, vector<8x32xf32> -> vector<8x32xf32>
    %c0_54 = arith.constant 0 : index
    %c0_55 = arith.constant 0 : index
    %c1_56 = arith.constant 1 : index
    %c0_57 = arith.constant 0 : index
    %c0_58 = arith.constant 0 : index
    %72 = vector.load %arg5[%c0_54, %c0_55, %c1_56, %c0_57, %c0_58] : memref<2x3x2x32x16xbf16, #tpu.memory_space<vmem>>, vector<1x1x1x32x16xbf16>
    %73 = vector.shape_cast %72 : vector<1x1x1x32x16xbf16> to vector<32x16xbf16>
    %cst_59 = arith.constant dense<0.000000e+00> : vector<8x16xf32>
    %74 = tpu.matmul %28, %73, %cst_59 {dimension_numbers = #tpu.dot_dimension_numbers<[1], [0], [0], [1], [0, 0, 1, 1], [], []>} : vector<8x32xbf16>, vector<32x16xbf16>, vector<8x16xf32> -> vector<8x16xf32>
    %c0_60 = arith.constant 0 : index
    %c0_61 = arith.constant 0 : index
    %c1_62 = arith.constant 1 : index
    %c0_63 = arith.constant 0 : index
    %c0_64 = arith.constant 0 : index
    %75 = vector.load %arg6[%c0_60, %c0_61, %c1_62, %c0_63, %c0_64] : memref<2x3x2x1x16xf32, #tpu.memory_space<vmem>>, vector<1x1x1x1x16xf32>
    %76 = vector.shape_cast %75 : vector<1x1x1x1x16xf32> to vector<1x16xf32>
    %77 = vector.broadcast %76 : vector<1x16xf32> to vector<8x16xf32>
    %78 = arith.addf %74, %77 : vector<8x16xf32>
    %c0_65 = arith.constant 0 : index
    %c1_66 = arith.constant 1 : index
    %c1_67 = arith.constant 1 : index
    %c0_68 = arith.constant 0 : index
    %c0_69 = arith.constant 0 : index
    %79 = vector.load %arg5[%c0_65, %c1_66, %c1_67, %c0_68, %c0_69] : memref<2x3x2x32x16xbf16, #tpu.memory_space<vmem>>, vector<1x1x1x32x16xbf16>
    %80 = vector.shape_cast %79 : vector<1x1x1x32x16xbf16> to vector<32x16xbf16>
    %cst_70 = arith.constant dense<0.000000e+00> : vector<8x16xf32>
    %81 = tpu.matmul %28, %80, %cst_70 {dimension_numbers = #tpu.dot_dimension_numbers<[1], [0], [0], [1], [0, 0, 1, 1], [], []>} : vector<8x32xbf16>, vector<32x16xbf16>, vector<8x16xf32> -> vector<8x16xf32>
    %c0_71 = arith.constant 0 : index
    %c1_72 = arith.constant 1 : index
    %c1_73 = arith.constant 1 : index
    %c0_74 = arith.constant 0 : index
    %c0_75 = arith.constant 0 : index
    %82 = vector.load %arg6[%c0_71, %c1_72, %c1_73, %c0_74, %c0_75] : memref<2x3x2x1x16xf32, #tpu.memory_space<vmem>>, vector<1x1x1x1x16xf32>
    %83 = vector.shape_cast %82 : vector<1x1x1x1x16xf32> to vector<1x16xf32>
    %84 = vector.broadcast %83 : vector<1x16xf32> to vector<8x16xf32>
    %85 = arith.addf %81, %84 : vector<8x16xf32>
    %c0_76 = arith.constant 0 : index
    %c2_77 = arith.constant 2 : index
    %c1_78 = arith.constant 1 : index
    %c0_79 = arith.constant 0 : index
    %c0_80 = arith.constant 0 : index
    %86 = vector.load %arg5[%c0_76, %c2_77, %c1_78, %c0_79, %c0_80] : memref<2x3x2x32x16xbf16, #tpu.memory_space<vmem>>, vector<1x1x1x32x16xbf16>
    %87 = vector.shape_cast %86 : vector<1x1x1x32x16xbf16> to vector<32x16xbf16>
    %cst_81 = arith.constant dense<0.000000e+00> : vector<8x16xf32>
    %88 = tpu.matmul %28, %87, %cst_81 {dimension_numbers = #tpu.dot_dimension_numbers<[1], [0], [0], [1], [0, 0, 1, 1], [], []>} : vector<8x32xbf16>, vector<32x16xbf16>, vector<8x16xf32> -> vector<8x16xf32>
    %c0_82 = arith.constant 0 : index
    %c2_83 = arith.constant 2 : index
    %c1_84 = arith.constant 1 : index
    %c0_85 = arith.constant 0 : index
    %c0_86 = arith.constant 0 : index
    %89 = vector.load %arg6[%c0_82, %c2_83, %c1_84, %c0_85, %c0_86] : memref<2x3x2x1x16xf32, #tpu.memory_space<vmem>>, vector<1x1x1x1x16xf32>
    %90 = vector.shape_cast %89 : vector<1x1x1x1x16xf32> to vector<1x16xf32>
    %91 = vector.broadcast %90 : vector<1x16xf32> to vector<8x16xf32>
    %92 = arith.addf %88, %91 : vector<8x16xf32>
    %cst_87 = arith.constant dense<0.000000e+00> : vector<8x8xf32>
    %93 = tpu.matmul %78, %85, %cst_87 {dimension_numbers = #tpu.dot_dimension_numbers<[1], [1], [0], [0], [0, 0, 1, 0], [], []>} : vector<8x16xf32>, vector<8x16xf32>, vector<8x8xf32> -> vector<8x8xf32>
    %cst_88 = arith.constant 2.500000e-01 : f32
    %94 = vector.broadcast %cst_88 : f32 to vector<8x8xf32>
    %95 = arith.mulf %93, %94 : vector<8x8xf32>
    %96 = vector.broadcast %3 : vector<1x8xf32> to vector<8x8xf32>
    %97 = arith.addf %95, %96 : vector<8x8xf32>
    %cst_89 = arith.constant dense<0xFF800000> : vector<8xf32>
    %98 = vector.multi_reduction <maximumf>, %97, %cst_89 [1] : vector<8x8xf32> to vector<8xf32>
    %99 = vector.shape_cast %98 : vector<8xf32> to vector<8x1xf32>
    %100 = vector.broadcast %99 : vector<8x1xf32> to vector<8x8xf32>
    %101 = arith.subf %97, %100 : vector<8x8xf32>
    %102 = math.exp %101 : vector<8x8xf32>
    %cst_90 = arith.constant dense<0.000000e+00> : vector<8xf32>
    %103 = vector.multi_reduction <add>, %102, %cst_90 [1] : vector<8x8xf32> to vector<8xf32>
    %104 = vector.shape_cast %103 : vector<8xf32> to vector<8x1xf32>
    %105 = tpu.reciprocal %104 {approx = true} : vector<8x1xf32> -> vector<8x1xf32>
    %106 = vector.broadcast %105 : vector<8x1xf32> to vector<8x8xf32>
    %107 = arith.mulf %102, %106 : vector<8x8xf32>
    %108 = arith.truncf %107 : vector<8x8xf32> to vector<8x8xbf16>
    %109 = arith.truncf %92 : vector<8x16xf32> to vector<8x16xbf16>
    %cst_91 = arith.constant dense<0.000000e+00> : vector<8x16xf32>
    %110 = tpu.matmul %108, %109, %cst_91 {dimension_numbers = #tpu.dot_dimension_numbers<[1], [0], [0], [1], [0, 0, 1, 1], [], []>} : vector<8x8xbf16>, vector<8x16xbf16>, vector<8x16xf32> -> vector<8x16xf32>
    %111 = arith.truncf %110 : vector<8x16xf32> to vector<8x16xbf16>
    %c0_92 = arith.constant 0 : index
    %c1_93 = arith.constant 1 : index
    %c0_94 = arith.constant 0 : index
    %c0_95 = arith.constant 0 : index
    %112 = vector.load %arg7[%c0_92, %c1_93, %c0_94, %c0_95] : memref<2x2x16x32xbf16, #tpu.memory_space<vmem>>, vector<1x1x16x32xbf16>
    %113 = vector.shape_cast %112 : vector<1x1x16x32xbf16> to vector<16x32xbf16>
    %cst_96 = arith.constant dense<0.000000e+00> : vector<8x32xf32>
    %114 = tpu.matmul %111, %113, %cst_96 {dimension_numbers = #tpu.dot_dimension_numbers<[1], [0], [0], [1], [0, 0, 1, 1], [], []>} : vector<8x16xbf16>, vector<16x32xbf16>, vector<8x32xf32> -> vector<8x32xf32>
    %115 = arith.addf %71, %114 : vector<8x32xf32>
    %c0_97 = arith.constant 0 : index
    %c0_98 = arith.constant 0 : index
    %c0_99 = arith.constant 0 : index
    %116 = vector.load %arg8[%c0_97, %c0_98, %c0_99] : memref<2x1x32xf32, #tpu.memory_space<vmem>>, vector<1x1x32xf32>
    %117 = vector.shape_cast %116 : vector<1x1x32xf32> to vector<1x32xf32>
    %118 = vector.broadcast %117 : vector<1x32xf32> to vector<8x32xf32>
    %119 = arith.addf %115, %118 : vector<8x32xf32>
    %120 = arith.addf %119, %27 : vector<8x32xf32>
    %c0_100 = arith.constant 0 : index
    %c0_101 = arith.constant 0 : index
    %c0_102 = arith.constant 0 : index
    %121 = vector.load %arg9[%c0_100, %c0_101, %c0_102] : memref<2x1x32xf32, #tpu.memory_space<vmem>>, vector<1x1x32xf32>
    %122 = vector.shape_cast %121 : vector<1x1x32xf32> to vector<1x32xf32>
    %c0_103 = arith.constant 0 : index
    %c0_104 = arith.constant 0 : index
    %c0_105 = arith.constant 0 : index
    %123 = vector.load %arg10[%c0_103, %c0_104, %c0_105] : memref<2x1x32xf32, #tpu.memory_space<vmem>>, vector<1x1x32xf32>
    %124 = vector.shape_cast %123 : vector<1x1x32xf32> to vector<1x32xf32>
    %cst_106 = arith.constant dense<0.000000e+00> : vector<8xf32>
    %125 = vector.multi_reduction <add>, %120, %cst_106 [1] : vector<8x32xf32> to vector<8xf32>
    %126 = vector.shape_cast %125 : vector<8xf32> to vector<8x1xf32>
    %cst_107 = arith.constant 3.200000e+01 : f32
    %127 = vector.broadcast %cst_107 : f32 to vector<8x1xf32>
    %128 = arith.divf %126, %127 : vector<8x1xf32>
    %129 = vector.broadcast %128 : vector<8x1xf32> to vector<8x32xf32>
    %130 = arith.subf %120, %129 : vector<8x32xf32>
    %131 = arith.mulf %130, %130 : vector<8x32xf32>
    %cst_108 = arith.constant dense<0.000000e+00> : vector<8xf32>
    %132 = vector.multi_reduction <add>, %131, %cst_108 [1] : vector<8x32xf32> to vector<8xf32>
    %133 = vector.shape_cast %132 : vector<8xf32> to vector<8x1xf32>
    %cst_109 = arith.constant 3.200000e+01 : f32
    %134 = vector.broadcast %cst_109 : f32 to vector<8x1xf32>
    %135 = arith.divf %133, %134 : vector<8x1xf32>
    %136 = vector.broadcast %128 : vector<8x1xf32> to vector<8x32xf32>
    %137 = arith.subf %120, %136 : vector<8x32xf32>
    %cst_110 = arith.constant 9.99999996E-13 : f32
    %138 = vector.broadcast %cst_110 : f32 to vector<8x1xf32>
    %139 = arith.addf %135, %138 : vector<8x1xf32>
    %140 = math.rsqrt %139 : vector<8x1xf32>
    %141 = vector.broadcast %140 : vector<8x1xf32> to vector<8x32xf32>
    %142 = arith.mulf %137, %141 : vector<8x32xf32>
    %143 = vector.broadcast %122 : vector<1x32xf32> to vector<8x32xf32>
    %144 = arith.mulf %142, %143 : vector<8x32xf32>
    %145 = vector.broadcast %124 : vector<1x32xf32> to vector<8x32xf32>
    %146 = arith.addf %144, %145 : vector<8x32xf32>
    %147 = arith.truncf %146 : vector<8x32xf32> to vector<8x32xbf16>
    %c0_111 = arith.constant 0 : index
    %c0_112 = arith.constant 0 : index
    %c0_113 = arith.constant 0 : index
    %148 = vector.load %arg11[%c0_111, %c0_112, %c0_113] : memref<2x32x64xbf16, #tpu.memory_space<vmem>>, vector<1x32x64xbf16>
    %149 = vector.shape_cast %148 : vector<1x32x64xbf16> to vector<32x64xbf16>
    %cst_114 = arith.constant dense<0.000000e+00> : vector<8x64xf32>
    %150 = tpu.matmul %147, %149, %cst_114 {dimension_numbers = #tpu.dot_dimension_numbers<[1], [0], [0], [1], [0, 0, 1, 1], [], []>} : vector<8x32xbf16>, vector<32x64xbf16>, vector<8x64xf32> -> vector<8x64xf32>
    %c0_115 = arith.constant 0 : index
    %c0_116 = arith.constant 0 : index
    %c0_117 = arith.constant 0 : index
    %151 = vector.load %arg12[%c0_115, %c0_116, %c0_117] : memref<2x1x64xf32, #tpu.memory_space<vmem>>, vector<1x1x64xf32>
    %152 = vector.shape_cast %151 : vector<1x1x64xf32> to vector<1x64xf32>
    %153 = vector.broadcast %152 : vector<1x64xf32> to vector<8x64xf32>
    %154 = arith.addf %150, %153 : vector<8x64xf32>
    %cst_118 = arith.constant 5.000000e-01 : f32
    %155 = vector.broadcast %cst_118 : f32 to vector<8x64xf32>
    %156 = arith.mulf %155, %154 : vector<8x64xf32>
    %cst_119 = arith.constant 4.471500e-02 : f32
    %157 = vector.broadcast %cst_119 : f32 to vector<8x64xf32>
    %158 = arith.mulf %157, %154 : vector<8x64xf32>
    %159 = arith.mulf %158, %154 : vector<8x64xf32>
    %160 = arith.mulf %159, %154 : vector<8x64xf32>
    %161 = arith.addf %154, %160 : vector<8x64xf32>
    %cst_120 = arith.constant 0.797884583 : f32
    %162 = vector.broadcast %cst_120 : f32 to vector<8x64xf32>
    %163 = arith.mulf %162, %161 : vector<8x64xf32>
    %164 = math.tanh %163 : vector<8x64xf32>
    %cst_121 = arith.constant 1.000000e+00 : f32
    %165 = vector.broadcast %cst_121 : f32 to vector<8x64xf32>
    %166 = arith.addf %165, %164 : vector<8x64xf32>
    %167 = arith.mulf %156, %166 : vector<8x64xf32>
    %168 = arith.truncf %167 : vector<8x64xf32> to vector<8x64xbf16>
    %c0_122 = arith.constant 0 : index
    %c0_123 = arith.constant 0 : index
    %c0_124 = arith.constant 0 : index
    %169 = vector.load %arg13[%c0_122, %c0_123, %c0_124] : memref<2x64x32xbf16, #tpu.memory_space<vmem>>, vector<1x64x32xbf16>
    %170 = vector.shape_cast %169 : vector<1x64x32xbf16> to vector<64x32xbf16>
    %cst_125 = arith.constant dense<0.000000e+00> : vector<8x32xf32>
    %171 = tpu.matmul %168, %170, %cst_125 {dimension_numbers = #tpu.dot_dimension_numbers<[1], [0], [0], [1], [0, 0, 1, 1], [], []>} : vector<8x64xbf16>, vector<64x32xbf16>, vector<8x32xf32> -> vector<8x32xf32>
    %c0_126 = arith.constant 0 : index
    %c0_127 = arith.constant 0 : index
    %c0_128 = arith.constant 0 : index
    %172 = vector.load %arg14[%c0_126, %c0_127, %c0_128] : memref<2x1x32xf32, #tpu.memory_space<vmem>>, vector<1x1x32xf32>
    %173 = vector.shape_cast %172 : vector<1x1x32xf32> to vector<1x32xf32>
    %174 = vector.broadcast %173 : vector<1x32xf32> to vector<8x32xf32>
    %175 = arith.addf %171, %174 : vector<8x32xf32>
    %176 = arith.addf %175, %146 : vector<8x32xf32>
    %c0_129 = arith.constant 0 : index
    %c0_130 = arith.constant 0 : index
    %c0_131 = arith.constant 0 : index
    %177 = vector.load %arg15[%c0_129, %c0_130, %c0_131] : memref<2x1x32xf32, #tpu.memory_space<vmem>>, vector<1x1x32xf32>
    %178 = vector.shape_cast %177 : vector<1x1x32xf32> to vector<1x32xf32>
    %c0_132 = arith.constant 0 : index
    %c0_133 = arith.constant 0 : index
    %c0_134 = arith.constant 0 : index
    %179 = vector.load %arg16[%c0_132, %c0_133, %c0_134] : memref<2x1x32xf32, #tpu.memory_space<vmem>>, vector<1x1x32xf32>
    %180 = vector.shape_cast %179 : vector<1x1x32xf32> to vector<1x32xf32>
    %cst_135 = arith.constant dense<0.000000e+00> : vector<8xf32>
    %181 = vector.multi_reduction <add>, %176, %cst_135 [1] : vector<8x32xf32> to vector<8xf32>
    %182 = vector.shape_cast %181 : vector<8xf32> to vector<8x1xf32>
    %cst_136 = arith.constant 3.200000e+01 : f32
    %183 = vector.broadcast %cst_136 : f32 to vector<8x1xf32>
    %184 = arith.divf %182, %183 : vector<8x1xf32>
    %185 = vector.broadcast %184 : vector<8x1xf32> to vector<8x32xf32>
    %186 = arith.subf %176, %185 : vector<8x32xf32>
    %187 = arith.mulf %186, %186 : vector<8x32xf32>
    %cst_137 = arith.constant dense<0.000000e+00> : vector<8xf32>
    %188 = vector.multi_reduction <add>, %187, %cst_137 [1] : vector<8x32xf32> to vector<8xf32>
    %189 = vector.shape_cast %188 : vector<8xf32> to vector<8x1xf32>
    %cst_138 = arith.constant 3.200000e+01 : f32
    %190 = vector.broadcast %cst_138 : f32 to vector<8x1xf32>
    %191 = arith.divf %189, %190 : vector<8x1xf32>
    %192 = vector.broadcast %184 : vector<8x1xf32> to vector<8x32xf32>
    %193 = arith.subf %176, %192 : vector<8x32xf32>
    %cst_139 = arith.constant 9.99999996E-13 : f32
    %194 = vector.broadcast %cst_139 : f32 to vector<8x1xf32>
    %195 = arith.addf %191, %194 : vector<8x1xf32>
    %196 = math.rsqrt %195 : vector<8x1xf32>
    %197 = vector.broadcast %196 : vector<8x1xf32> to vector<8x32xf32>
    %198 = arith.mulf %193, %197 : vector<8x32xf32>
    %199 = vector.broadcast %178 : vector<1x32xf32> to vector<8x32xf32>
    %200 = arith.mulf %198, %199 : vector<8x32xf32>
    %201 = vector.broadcast %180 : vector<1x32xf32> to vector<8x32xf32>
    %202 = arith.addf %200, %201 : vector<8x32xf32>
    %203 = arith.truncf %202 : vector<8x32xf32> to vector<8x32xbf16>
    %c1_140 = arith.constant 1 : index
    %c0_141 = arith.constant 0 : index
    %c0_142 = arith.constant 0 : index
    %c0_143 = arith.constant 0 : index
    %c0_144 = arith.constant 0 : index
    %204 = vector.load %arg5[%c1_140, %c0_141, %c0_142, %c0_143, %c0_144] : memref<2x3x2x32x16xbf16, #tpu.memory_space<vmem>>, vector<1x1x1x32x16xbf16>
    %205 = vector.shape_cast %204 : vector<1x1x1x32x16xbf16> to vector<32x16xbf16>
    %cst_145 = arith.constant dense<0.000000e+00> : vector<8x16xf32>
    %206 = tpu.matmul %203, %205, %cst_145 {dimension_numbers = #tpu.dot_dimension_numbers<[1], [0], [0], [1], [0, 0, 1, 1], [], []>} : vector<8x32xbf16>, vector<32x16xbf16>, vector<8x16xf32> -> vector<8x16xf32>
    %c1_146 = arith.constant 1 : index
    %c0_147 = arith.constant 0 : index
    %c0_148 = arith.constant 0 : index
    %c0_149 = arith.constant 0 : index
    %c0_150 = arith.constant 0 : index
    %207 = vector.load %arg6[%c1_146, %c0_147, %c0_148, %c0_149, %c0_150] : memref<2x3x2x1x16xf32, #tpu.memory_space<vmem>>, vector<1x1x1x1x16xf32>
    %208 = vector.shape_cast %207 : vector<1x1x1x1x16xf32> to vector<1x16xf32>
    %209 = vector.broadcast %208 : vector<1x16xf32> to vector<8x16xf32>
    %210 = arith.addf %206, %209 : vector<8x16xf32>
    %c1_151 = arith.constant 1 : index
    %c1_152 = arith.constant 1 : index
    %c0_153 = arith.constant 0 : index
    %c0_154 = arith.constant 0 : index
    %c0_155 = arith.constant 0 : index
    %211 = vector.load %arg5[%c1_151, %c1_152, %c0_153, %c0_154, %c0_155] : memref<2x3x2x32x16xbf16, #tpu.memory_space<vmem>>, vector<1x1x1x32x16xbf16>
    %212 = vector.shape_cast %211 : vector<1x1x1x32x16xbf16> to vector<32x16xbf16>
    %cst_156 = arith.constant dense<0.000000e+00> : vector<8x16xf32>
    %213 = tpu.matmul %203, %212, %cst_156 {dimension_numbers = #tpu.dot_dimension_numbers<[1], [0], [0], [1], [0, 0, 1, 1], [], []>} : vector<8x32xbf16>, vector<32x16xbf16>, vector<8x16xf32> -> vector<8x16xf32>
    %c1_157 = arith.constant 1 : index
    %c1_158 = arith.constant 1 : index
    %c0_159 = arith.constant 0 : index
    %c0_160 = arith.constant 0 : index
    %c0_161 = arith.constant 0 : index
    %214 = vector.load %arg6[%c1_157, %c1_158, %c0_159, %c0_160, %c0_161] : memref<2x3x2x1x16xf32, #tpu.memory_space<vmem>>, vector<1x1x1x1x16xf32>
    %215 = vector.shape_cast %214 : vector<1x1x1x1x16xf32> to vector<1x16xf32>
    %216 = vector.broadcast %215 : vector<1x16xf32> to vector<8x16xf32>
    %217 = arith.addf %213, %216 : vector<8x16xf32>
    %c1_162 = arith.constant 1 : index
    %c2_163 = arith.constant 2 : index
    %c0_164 = arith.constant 0 : index
    %c0_165 = arith.constant 0 : index
    %c0_166 = arith.constant 0 : index
    %218 = vector.load %arg5[%c1_162, %c2_163, %c0_164, %c0_165, %c0_166] : memref<2x3x2x32x16xbf16, #tpu.memory_space<vmem>>, vector<1x1x1x32x16xbf16>
    %219 = vector.shape_cast %218 : vector<1x1x1x32x16xbf16> to vector<32x16xbf16>
    %cst_167 = arith.constant dense<0.000000e+00> : vector<8x16xf32>
    %220 = tpu.matmul %203, %219, %cst_167 {dimension_numbers = #tpu.dot_dimension_numbers<[1], [0], [0], [1], [0, 0, 1, 1], [], []>} : vector<8x32xbf16>, vector<32x16xbf16>, vector<8x16xf32> -> vector<8x16xf32>
    %c1_168 = arith.constant 1 : index
    %c2_169 = arith.constant 2 : index
    %c0_170 = arith.constant 0 : index
    %c0_171 = arith.constant 0 : index
    %c0_172 = arith.constant 0 : index
    %221 = vector.load %arg6[%c1_168, %c2_169, %c0_170, %c0_171, %c0_172] : memref<2x3x2x1x16xf32, #tpu.memory_space<vmem>>, vector<1x1x1x1x16xf32>
    %222 = vector.shape_cast %221 : vector<1x1x1x1x16xf32> to vector<1x16xf32>
    %223 = vector.broadcast %222 : vector<1x16xf32> to vector<8x16xf32>
    %224 = arith.addf %220, %223 : vector<8x16xf32>
    %cst_173 = arith.constant dense<0.000000e+00> : vector<8x8xf32>
    %225 = tpu.matmul %210, %217, %cst_173 {dimension_numbers = #tpu.dot_dimension_numbers<[1], [1], [0], [0], [0, 0, 1, 0], [], []>} : vector<8x16xf32>, vector<8x16xf32>, vector<8x8xf32> -> vector<8x8xf32>
    %cst_174 = arith.constant 2.500000e-01 : f32
    %226 = vector.broadcast %cst_174 : f32 to vector<8x8xf32>
    %227 = arith.mulf %225, %226 : vector<8x8xf32>
    %228 = vector.broadcast %3 : vector<1x8xf32> to vector<8x8xf32>
    %229 = arith.addf %227, %228 : vector<8x8xf32>
    %cst_175 = arith.constant dense<0xFF800000> : vector<8xf32>
    %230 = vector.multi_reduction <maximumf>, %229, %cst_175 [1] : vector<8x8xf32> to vector<8xf32>
    %231 = vector.shape_cast %230 : vector<8xf32> to vector<8x1xf32>
    %232 = vector.broadcast %231 : vector<8x1xf32> to vector<8x8xf32>
    %233 = arith.subf %229, %232 : vector<8x8xf32>
    %234 = math.exp %233 : vector<8x8xf32>
    %cst_176 = arith.constant dense<0.000000e+00> : vector<8xf32>
    %235 = vector.multi_reduction <add>, %234, %cst_176 [1] : vector<8x8xf32> to vector<8xf32>
    %236 = vector.shape_cast %235 : vector<8xf32> to vector<8x1xf32>
    %237 = tpu.reciprocal %236 {approx = true} : vector<8x1xf32> -> vector<8x1xf32>
    %238 = vector.broadcast %237 : vector<8x1xf32> to vector<8x8xf32>
    %239 = arith.mulf %234, %238 : vector<8x8xf32>
    %240 = arith.truncf %239 : vector<8x8xf32> to vector<8x8xbf16>
    %241 = arith.truncf %224 : vector<8x16xf32> to vector<8x16xbf16>
    %cst_177 = arith.constant dense<0.000000e+00> : vector<8x16xf32>
    %242 = tpu.matmul %240, %241, %cst_177 {dimension_numbers = #tpu.dot_dimension_numbers<[1], [0], [0], [1], [0, 0, 1, 1], [], []>} : vector<8x8xbf16>, vector<8x16xbf16>, vector<8x16xf32> -> vector<8x16xf32>
    %243 = arith.truncf %242 : vector<8x16xf32> to vector<8x16xbf16>
    %c1_178 = arith.constant 1 : index
    %c0_179 = arith.constant 0 : index
    %c0_180 = arith.constant 0 : index
    %c0_181 = arith.constant 0 : index
    %244 = vector.load %arg7[%c1_178, %c0_179, %c0_180, %c0_181] : memref<2x2x16x32xbf16, #tpu.memory_space<vmem>>, vector<1x1x16x32xbf16>
    %245 = vector.shape_cast %244 : vector<1x1x16x32xbf16> to vector<16x32xbf16>
    %cst_182 = arith.constant dense<0.000000e+00> : vector<8x32xf32>
    %246 = tpu.matmul %243, %245, %cst_182 {dimension_numbers = #tpu.dot_dimension_numbers<[1], [0], [0], [1], [0, 0, 1, 1], [], []>} : vector<8x16xbf16>, vector<16x32xbf16>, vector<8x32xf32> -> vector<8x32xf32>
    %c1_183 = arith.constant 1 : index
    %c0_184 = arith.constant 0 : index
    %c1_185 = arith.constant 1 : index
    %c0_186 = arith.constant 0 : index
    %c0_187 = arith.constant 0 : index
    %247 = vector.load %arg5[%c1_183, %c0_184, %c1_185, %c0_186, %c0_187] : memref<2x3x2x32x16xbf16, #tpu.memory_space<vmem>>, vector<1x1x1x32x16xbf16>
    %248 = vector.shape_cast %247 : vector<1x1x1x32x16xbf16> to vector<32x16xbf16>
    %cst_188 = arith.constant dense<0.000000e+00> : vector<8x16xf32>
    %249 = tpu.matmul %203, %248, %cst_188 {dimension_numbers = #tpu.dot_dimension_numbers<[1], [0], [0], [1], [0, 0, 1, 1], [], []>} : vector<8x32xbf16>, vector<32x16xbf16>, vector<8x16xf32> -> vector<8x16xf32>
    %c1_189 = arith.constant 1 : index
    %c0_190 = arith.constant 0 : index
    %c1_191 = arith.constant 1 : index
    %c0_192 = arith.constant 0 : index
    %c0_193 = arith.constant 0 : index
    %250 = vector.load %arg6[%c1_189, %c0_190, %c1_191, %c0_192, %c0_193] : memref<2x3x2x1x16xf32, #tpu.memory_space<vmem>>, vector<1x1x1x1x16xf32>
    %251 = vector.shape_cast %250 : vector<1x1x1x1x16xf32> to vector<1x16xf32>
    %252 = vector.broadcast %251 : vector<1x16xf32> to vector<8x16xf32>
    %253 = arith.addf %249, %252 : vector<8x16xf32>
    %c1_194 = arith.constant 1 : index
    %c1_195 = arith.constant 1 : index
    %c1_196 = arith.constant 1 : index
    %c0_197 = arith.constant 0 : index
    %c0_198 = arith.constant 0 : index
    %254 = vector.load %arg5[%c1_194, %c1_195, %c1_196, %c0_197, %c0_198] : memref<2x3x2x32x16xbf16, #tpu.memory_space<vmem>>, vector<1x1x1x32x16xbf16>
    %255 = vector.shape_cast %254 : vector<1x1x1x32x16xbf16> to vector<32x16xbf16>
    %cst_199 = arith.constant dense<0.000000e+00> : vector<8x16xf32>
    %256 = tpu.matmul %203, %255, %cst_199 {dimension_numbers = #tpu.dot_dimension_numbers<[1], [0], [0], [1], [0, 0, 1, 1], [], []>} : vector<8x32xbf16>, vector<32x16xbf16>, vector<8x16xf32> -> vector<8x16xf32>
    %c1_200 = arith.constant 1 : index
    %c1_201 = arith.constant 1 : index
    %c1_202 = arith.constant 1 : index
    %c0_203 = arith.constant 0 : index
    %c0_204 = arith.constant 0 : index
    %257 = vector.load %arg6[%c1_200, %c1_201, %c1_202, %c0_203, %c0_204] : memref<2x3x2x1x16xf32, #tpu.memory_space<vmem>>, vector<1x1x1x1x16xf32>
    %258 = vector.shape_cast %257 : vector<1x1x1x1x16xf32> to vector<1x16xf32>
    %259 = vector.broadcast %258 : vector<1x16xf32> to vector<8x16xf32>
    %260 = arith.addf %256, %259 : vector<8x16xf32>
    %c1_205 = arith.constant 1 : index
    %c2_206 = arith.constant 2 : index
    %c1_207 = arith.constant 1 : index
    %c0_208 = arith.constant 0 : index
    %c0_209 = arith.constant 0 : index
    %261 = vector.load %arg5[%c1_205, %c2_206, %c1_207, %c0_208, %c0_209] : memref<2x3x2x32x16xbf16, #tpu.memory_space<vmem>>, vector<1x1x1x32x16xbf16>
    %262 = vector.shape_cast %261 : vector<1x1x1x32x16xbf16> to vector<32x16xbf16>
    %cst_210 = arith.constant dense<0.000000e+00> : vector<8x16xf32>
    %263 = tpu.matmul %203, %262, %cst_210 {dimension_numbers = #tpu.dot_dimension_numbers<[1], [0], [0], [1], [0, 0, 1, 1], [], []>} : vector<8x32xbf16>, vector<32x16xbf16>, vector<8x16xf32> -> vector<8x16xf32>
    %c1_211 = arith.constant 1 : index
    %c2_212 = arith.constant 2 : index
    %c1_213 = arith.constant 1 : index
    %c0_214 = arith.constant 0 : index
    %c0_215 = arith.constant 0 : index
    %264 = vector.load %arg6[%c1_211, %c2_212, %c1_213, %c0_214, %c0_215] : memref<2x3x2x1x16xf32, #tpu.memory_space<vmem>>, vector<1x1x1x1x16xf32>
    %265 = vector.shape_cast %264 : vector<1x1x1x1x16xf32> to vector<1x16xf32>
    %266 = vector.broadcast %265 : vector<1x16xf32> to vector<8x16xf32>
    %267 = arith.addf %263, %266 : vector<8x16xf32>
    %cst_216 = arith.constant dense<0.000000e+00> : vector<8x8xf32>
    %268 = tpu.matmul %253, %260, %cst_216 {dimension_numbers = #tpu.dot_dimension_numbers<[1], [1], [0], [0], [0, 0, 1, 0], [], []>} : vector<8x16xf32>, vector<8x16xf32>, vector<8x8xf32> -> vector<8x8xf32>
    %cst_217 = arith.constant 2.500000e-01 : f32
    %269 = vector.broadcast %cst_217 : f32 to vector<8x8xf32>
    %270 = arith.mulf %268, %269 : vector<8x8xf32>
    %271 = vector.broadcast %3 : vector<1x8xf32> to vector<8x8xf32>
    %272 = arith.addf %270, %271 : vector<8x8xf32>
    %cst_218 = arith.constant dense<0xFF800000> : vector<8xf32>
    %273 = vector.multi_reduction <maximumf>, %272, %cst_218 [1] : vector<8x8xf32> to vector<8xf32>
    %274 = vector.shape_cast %273 : vector<8xf32> to vector<8x1xf32>
    %275 = vector.broadcast %274 : vector<8x1xf32> to vector<8x8xf32>
    %276 = arith.subf %272, %275 : vector<8x8xf32>
    %277 = math.exp %276 : vector<8x8xf32>
    %cst_219 = arith.constant dense<0.000000e+00> : vector<8xf32>
    %278 = vector.multi_reduction <add>, %277, %cst_219 [1] : vector<8x8xf32> to vector<8xf32>
    %279 = vector.shape_cast %278 : vector<8xf32> to vector<8x1xf32>
    %280 = tpu.reciprocal %279 {approx = true} : vector<8x1xf32> -> vector<8x1xf32>
    %281 = vector.broadcast %280 : vector<8x1xf32> to vector<8x8xf32>
    %282 = arith.mulf %277, %281 : vector<8x8xf32>
    %283 = arith.truncf %282 : vector<8x8xf32> to vector<8x8xbf16>
    %284 = arith.truncf %267 : vector<8x16xf32> to vector<8x16xbf16>
    %cst_220 = arith.constant dense<0.000000e+00> : vector<8x16xf32>
    %285 = tpu.matmul %283, %284, %cst_220 {dimension_numbers = #tpu.dot_dimension_numbers<[1], [0], [0], [1], [0, 0, 1, 1], [], []>} : vector<8x8xbf16>, vector<8x16xbf16>, vector<8x16xf32> -> vector<8x16xf32>
    %286 = arith.truncf %285 : vector<8x16xf32> to vector<8x16xbf16>
    %c1_221 = arith.constant 1 : index
    %c1_222 = arith.constant 1 : index
    %c0_223 = arith.constant 0 : index
    %c0_224 = arith.constant 0 : index
    %287 = vector.load %arg7[%c1_221, %c1_222, %c0_223, %c0_224] : memref<2x2x16x32xbf16, #tpu.memory_space<vmem>>, vector<1x1x16x32xbf16>
    %288 = vector.shape_cast %287 : vector<1x1x16x32xbf16> to vector<16x32xbf16>
    %cst_225 = arith.constant dense<0.000000e+00> : vector<8x32xf32>
    %289 = tpu.matmul %286, %288, %cst_225 {dimension_numbers = #tpu.dot_dimension_numbers<[1], [0], [0], [1], [0, 0, 1, 1], [], []>} : vector<8x16xbf16>, vector<16x32xbf16>, vector<8x32xf32> -> vector<8x32xf32>
    %290 = arith.addf %246, %289 : vector<8x32xf32>
    %c1_226 = arith.constant 1 : index
    %c0_227 = arith.constant 0 : index
    %c0_228 = arith.constant 0 : index
    %291 = vector.load %arg8[%c1_226, %c0_227, %c0_228] : memref<2x1x32xf32, #tpu.memory_space<vmem>>, vector<1x1x32xf32>
    %292 = vector.shape_cast %291 : vector<1x1x32xf32> to vector<1x32xf32>
    %293 = vector.broadcast %292 : vector<1x32xf32> to vector<8x32xf32>
    %294 = arith.addf %290, %293 : vector<8x32xf32>
    %295 = arith.addf %294, %202 : vector<8x32xf32>
    %c1_229 = arith.constant 1 : index
    %c0_230 = arith.constant 0 : index
    %c0_231 = arith.constant 0 : index
    %296 = vector.load %arg9[%c1_229, %c0_230, %c0_231] : memref<2x1x32xf32, #tpu.memory_space<vmem>>, vector<1x1x32xf32>
    %297 = vector.shape_cast %296 : vector<1x1x32xf32> to vector<1x32xf32>
    %c1_232 = arith.constant 1 : index
    %c0_233 = arith.constant 0 : index
    %c0_234 = arith.constant 0 : index
    %298 = vector.load %arg10[%c1_232, %c0_233, %c0_234] : memref<2x1x32xf32, #tpu.memory_space<vmem>>, vector<1x1x32xf32>
    %299 = vector.shape_cast %298 : vector<1x1x32xf32> to vector<1x32xf32>
    %cst_235 = arith.constant dense<0.000000e+00> : vector<8xf32>
    %300 = vector.multi_reduction <add>, %295, %cst_235 [1] : vector<8x32xf32> to vector<8xf32>
    %301 = vector.shape_cast %300 : vector<8xf32> to vector<8x1xf32>
    %cst_236 = arith.constant 3.200000e+01 : f32
    %302 = vector.broadcast %cst_236 : f32 to vector<8x1xf32>
    %303 = arith.divf %301, %302 : vector<8x1xf32>
    %304 = vector.broadcast %303 : vector<8x1xf32> to vector<8x32xf32>
    %305 = arith.subf %295, %304 : vector<8x32xf32>
    %306 = arith.mulf %305, %305 : vector<8x32xf32>
    %cst_237 = arith.constant dense<0.000000e+00> : vector<8xf32>
    %307 = vector.multi_reduction <add>, %306, %cst_237 [1] : vector<8x32xf32> to vector<8xf32>
    %308 = vector.shape_cast %307 : vector<8xf32> to vector<8x1xf32>
    %cst_238 = arith.constant 3.200000e+01 : f32
    %309 = vector.broadcast %cst_238 : f32 to vector<8x1xf32>
    %310 = arith.divf %308, %309 : vector<8x1xf32>
    %311 = vector.broadcast %303 : vector<8x1xf32> to vector<8x32xf32>
    %312 = arith.subf %295, %311 : vector<8x32xf32>
    %cst_239 = arith.constant 9.99999996E-13 : f32
    %313 = vector.broadcast %cst_239 : f32 to vector<8x1xf32>
    %314 = arith.addf %310, %313 : vector<8x1xf32>
    %315 = math.rsqrt %314 : vector<8x1xf32>
    %316 = vector.broadcast %315 : vector<8x1xf32> to vector<8x32xf32>
    %317 = arith.mulf %312, %316 : vector<8x32xf32>
    %318 = vector.broadcast %297 : vector<1x32xf32> to vector<8x32xf32>
    %319 = arith.mulf %317, %318 : vector<8x32xf32>
    %320 = vector.broadcast %299 : vector<1x32xf32> to vector<8x32xf32>
    %321 = arith.addf %319, %320 : vector<8x32xf32>
    %322 = arith.truncf %321 : vector<8x32xf32> to vector<8x32xbf16>
    %c1_240 = arith.constant 1 : index
    %c0_241 = arith.constant 0 : index
    %c0_242 = arith.constant 0 : index
    %323 = vector.load %arg11[%c1_240, %c0_241, %c0_242] : memref<2x32x64xbf16, #tpu.memory_space<vmem>>, vector<1x32x64xbf16>
    %324 = vector.shape_cast %323 : vector<1x32x64xbf16> to vector<32x64xbf16>
    %cst_243 = arith.constant dense<0.000000e+00> : vector<8x64xf32>
    %325 = tpu.matmul %322, %324, %cst_243 {dimension_numbers = #tpu.dot_dimension_numbers<[1], [0], [0], [1], [0, 0, 1, 1], [], []>} : vector<8x32xbf16>, vector<32x64xbf16>, vector<8x64xf32> -> vector<8x64xf32>
    %c1_244 = arith.constant 1 : index
    %c0_245 = arith.constant 0 : index
    %c0_246 = arith.constant 0 : index
    %326 = vector.load %arg12[%c1_244, %c0_245, %c0_246] : memref<2x1x64xf32, #tpu.memory_space<vmem>>, vector<1x1x64xf32>
    %327 = vector.shape_cast %326 : vector<1x1x64xf32> to vector<1x64xf32>
    %328 = vector.broadcast %327 : vector<1x64xf32> to vector<8x64xf32>
    %329 = arith.addf %325, %328 : vector<8x64xf32>
    %cst_247 = arith.constant 5.000000e-01 : f32
    %330 = vector.broadcast %cst_247 : f32 to vector<8x64xf32>
    %331 = arith.mulf %330, %329 : vector<8x64xf32>
    %cst_248 = arith.constant 4.471500e-02 : f32
    %332 = vector.broadcast %cst_248 : f32 to vector<8x64xf32>
    %333 = arith.mulf %332, %329 : vector<8x64xf32>
    %334 = arith.mulf %333, %329 : vector<8x64xf32>
    %335 = arith.mulf %334, %329 : vector<8x64xf32>
    %336 = arith.addf %329, %335 : vector<8x64xf32>
    %cst_249 = arith.constant 0.797884583 : f32
    %337 = vector.broadcast %cst_249 : f32 to vector<8x64xf32>
    %338 = arith.mulf %337, %336 : vector<8x64xf32>
    %339 = math.tanh %338 : vector<8x64xf32>
    %cst_250 = arith.constant 1.000000e+00 : f32
    %340 = vector.broadcast %cst_250 : f32 to vector<8x64xf32>
    %341 = arith.addf %340, %339 : vector<8x64xf32>
    %342 = arith.mulf %331, %341 : vector<8x64xf32>
    %343 = arith.truncf %342 : vector<8x64xf32> to vector<8x64xbf16>
    %c1_251 = arith.constant 1 : index
    %c0_252 = arith.constant 0 : index
    %c0_253 = arith.constant 0 : index
    %344 = vector.load %arg13[%c1_251, %c0_252, %c0_253] : memref<2x64x32xbf16, #tpu.memory_space<vmem>>, vector<1x64x32xbf16>
    %345 = vector.shape_cast %344 : vector<1x64x32xbf16> to vector<64x32xbf16>
    %cst_254 = arith.constant dense<0.000000e+00> : vector<8x32xf32>
    %346 = tpu.matmul %343, %345, %cst_254 {dimension_numbers = #tpu.dot_dimension_numbers<[1], [0], [0], [1], [0, 0, 1, 1], [], []>} : vector<8x64xbf16>, vector<64x32xbf16>, vector<8x32xf32> -> vector<8x32xf32>
    %c1_255 = arith.constant 1 : index
    %c0_256 = arith.constant 0 : index
    %c0_257 = arith.constant 0 : index
    %347 = vector.load %arg14[%c1_255, %c0_256, %c0_257] : memref<2x1x32xf32, #tpu.memory_space<vmem>>, vector<1x1x32xf32>
    %348 = vector.shape_cast %347 : vector<1x1x32xf32> to vector<1x32xf32>
    %349 = vector.broadcast %348 : vector<1x32xf32> to vector<8x32xf32>
    %350 = arith.addf %346, %349 : vector<8x32xf32>
    %351 = arith.addf %350, %321 : vector<8x32xf32>
    %c1_258 = arith.constant 1 : index
    %c0_259 = arith.constant 0 : index
    %c0_260 = arith.constant 0 : index
    %352 = vector.load %arg15[%c1_258, %c0_259, %c0_260] : memref<2x1x32xf32, #tpu.memory_space<vmem>>, vector<1x1x32xf32>
    %353 = vector.shape_cast %352 : vector<1x1x32xf32> to vector<1x32xf32>
    %c1_261 = arith.constant 1 : index
    %c0_262 = arith.constant 0 : index
    %c0_263 = arith.constant 0 : index
    %354 = vector.load %arg16[%c1_261, %c0_262, %c0_263] : memref<2x1x32xf32, #tpu.memory_space<vmem>>, vector<1x1x32xf32>
    %355 = vector.shape_cast %354 : vector<1x1x32xf32> to vector<1x32xf32>
    %cst_264 = arith.constant dense<0.000000e+00> : vector<8xf32>
    %356 = vector.multi_reduction <add>, %351, %cst_264 [1] : vector<8x32xf32> to vector<8xf32>
    %357 = vector.shape_cast %356 : vector<8xf32> to vector<8x1xf32>
    %cst_265 = arith.constant 3.200000e+01 : f32
    %358 = vector.broadcast %cst_265 : f32 to vector<8x1xf32>
    %359 = arith.divf %357, %358 : vector<8x1xf32>
    %360 = vector.broadcast %359 : vector<8x1xf32> to vector<8x32xf32>
    %361 = arith.subf %351, %360 : vector<8x32xf32>
    %362 = arith.mulf %361, %361 : vector<8x32xf32>
    %cst_266 = arith.constant dense<0.000000e+00> : vector<8xf32>
    %363 = vector.multi_reduction <add>, %362, %cst_266 [1] : vector<8x32xf32> to vector<8xf32>
    %364 = vector.shape_cast %363 : vector<8xf32> to vector<8x1xf32>
    %cst_267 = arith.constant 3.200000e+01 : f32
    %365 = vector.broadcast %cst_267 : f32 to vector<8x1xf32>
    %366 = arith.divf %364, %365 : vector<8x1xf32>
    %367 = vector.broadcast %359 : vector<8x1xf32> to vector<8x32xf32>
    %368 = arith.subf %351, %367 : vector<8x32xf32>
    %cst_268 = arith.constant 9.99999996E-13 : f32
    %369 = vector.broadcast %cst_268 : f32 to vector<8x1xf32>
    %370 = arith.addf %366, %369 : vector<8x1xf32>
    %371 = math.rsqrt %370 : vector<8x1xf32>
    %372 = vector.broadcast %371 : vector<8x1xf32> to vector<8x32xf32>
    %373 = arith.mulf %368, %372 : vector<8x32xf32>
    %374 = vector.broadcast %353 : vector<1x32xf32> to vector<8x32xf32>
    %375 = arith.mulf %373, %374 : vector<8x32xf32>
    %376 = vector.broadcast %355 : vector<1x32xf32> to vector<8x32xf32>
    %377 = arith.addf %375, %376 : vector<8x32xf32>
    %c0_269 = arith.constant 0 : index
    %c0_270 = arith.constant 0 : index
    %c0_271 = arith.constant 0 : index
    %378 = vector.load %arg17[%c0_269, %c0_270, %c0_271] : memref<1x8x32xf32, #tpu.memory_space<vmem>>, vector<1x8x32xf32>
    %379 = vector.shape_cast %378 : vector<1x8x32xf32> to vector<8x32xf32>
    %380 = vector.shape_cast %377 : vector<8x32xf32> to vector<1x8x32xf32>
    tpu.vector_store %arg17[%c0_269, %c0_270, %c0_271], %380 {strides = array<i32>} : memref<1x8x32xf32, #tpu.memory_space<vmem>>, vector<1x8x32xf32>,
    return
  }
  func.func @transform_0(%arg0: i32) -> (i32, i32, i32) {
    %c0_i32 = arith.constant 0 : i32
    %c0_i32_0 = arith.constant 0 : i32
    %c0_i32_1 = arith.constant 0 : i32
    return %arg0, %c0_i32, %c0_i32_0 : i32, i32, i32
  }
  func.func @transform_1(%arg0: i32) -> (i32, i32, i32) {
    %c0_i32 = arith.constant 0 : i32
    %c0_i32_0 = arith.constant 0 : i32
    %c0_i32_1 = arith.constant 0 : i32
    return %arg0, %c0_i32, %c0_i32_0 : i32, i32, i32
  }
  func.func @transform_2(%arg0: i32) -> (i32, i32) {
    %c0_i32 = arith.constant 0 : i32
    %c0_i32_0 = arith.constant 0 : i32
    %c0_i32_1 = arith.constant 0 : i32
    return %c0_i32, %c0_i32_0 : i32, i32
  }
  func.func @transform_3(%arg0: i32) -> (i32, i32) {
    %c0_i32 = arith.constant 0 : i32
    %c0_i32_0 = arith.constant 0 : i32
    %c0_i32_1 = arith.constant 0 : i32
    return %c0_i32, %c0_i32_0 : i32, i32
  }
  func.func @transform_4(%arg0: i32) -> (i32, i32, i32, i32, i32) {
    %c0_i32 = arith.constant 0 : i32
    %c0_i32_0 = arith.constant 0 : i32
    %c0_i32_1 = arith.constant 0 : i32
    %c0_i32_2 = arith.constant 0 : i32
    %c0_i32_3 = arith.constant 0 : i32
    %c0_i32_4 = arith.constant 0 : i32
    return %c0_i32, %c0_i32_0, %c0_i32_1, %c0_i32_2, %c0_i32_3 : i32, i32, i32, i32, i32
  }
  func.func @transform_5(%arg0: i32) -> (i32, i32, i32, i32, i32) {
    %c0_i32 = arith.constant 0 : i32
    %c0_i32_0 = arith.constant 0 : i32
    %c0_i32_1 = arith.constant 0 : i32
    %c0_i32_2 = arith.constant 0 : i32
    %c0_i32_3 = arith.constant 0 : i32
    %c0_i32_4 = arith.constant 0 : i32
    return %c0_i32, %c0_i32_0, %c0_i32_1, %c0_i32_2, %c0_i32_3 : i32, i32, i32, i32, i32
  }
  func.func @transform_6(%arg0: i32) -> (i32, i32, i32, i32) {
    %c0_i32 = arith.constant 0 : i32
    %c0_i32_0 = arith.constant 0 : i32
    %c0_i32_1 = arith.constant 0 : i32
    %c0_i32_2 = arith.constant 0 : i32
    %c0_i32_3 = arith.constant 0 : i32
    return %c0_i32, %c0_i32_0, %c0_i32_1, %c0_i32_2 : i32, i32, i32, i32
  }
  func.func @transform_7(%arg0: i32) -> (i32, i32, i32) {
    %c0_i32 = arith.constant 0 : i32
    %c0_i32_0 = arith.constant 0 : i32
    %c0_i32_1 = arith.constant 0 : i32
    %c0_i32_2 = arith.constant 0 : i32
    return %c0_i32, %c0_i32_0, %c0_i32_1 : i32, i32, i32
  }
  func.func @transform_8(%arg0: i32) -> (i32, i32, i32) {
    %c0_i32 = arith.constant 0 : i32
    %c0_i32_0 = arith.constant 0 : i32
    %c0_i32_1 = arith.constant 0 : i32
    %c0_i32_2 = arith.constant 0 : i32
    return %c0_i32, %c0_i32_0, %c0_i32_1 : i32, i32, i32
  }
  func.func @transform_9(%arg0: i32) -> (i32, i32, i32) {
    %c0_i32 = arith.constant 0 : i32
    %c0_i32_0 = arith.constant 0 : i32
    %c0_i32_1 = arith.constant 0 : i32
    %c0_i32_2 = arith.constant 0 : i32
    return %c0_i32, %c0_i32_0, %c0_i32_1 : i32, i32, i32
  }
  func.func @transform_10(%arg0: i32) -> (i32, i32, i32) {
    %c0_i32 = arith.constant 0 : i32
    %c0_i32_0 = arith.constant 0 : i32
    %c0_i32_1 = arith.constant 0 : i32
    %c0_i32_2 = arith.constant 0 : i32
    return %c0_i32, %c0_i32_0, %c0_i32_1 : i32, i32, i32
  }
  func.func @transform_11(%arg0: i32) -> (i32, i32, i32) {
    %c0_i32 = arith.constant 0 : i32
    %c0_i32_0 = arith.constant 0 : i32
    %c0_i32_1 = arith.constant 0 : i32
    %c0_i32_2 = arith.constant 0 : i32
    return %c0_i32, %c0_i32_0, %c0_i32_1 : i32, i32, i32
  }
  func.func @transform_12(%arg0: i32) -> (i32, i32, i32) {
    %c0_i32 = arith.constant 0 : i32
    %c0_i32_0 = arith.constant 0 : i32
    %c0_i32_1 = arith.constant 0 : i32
    %c0_i32_2 = arith.constant 0 : i32
    return %c0_i32, %c0_i32_0, %c0_i32_1 : i32, i32, i32
  }
  func.func @transform_13(%arg0: i32) -> (i32, i32, i32) {
    %c0_i32 = arith.constant 0 : i32
    %c0_i32_0 = arith.constant 0 : i32
    %c0_i32_1 = arith.constant 0 : i32
    %c0_i32_2 = arith.constant 0 : i32
    return %c0_i32, %c0_i32_0, %c0_i32_1 : i32, i32, i32
  }
  func.func @transform_14(%arg0: i32) -> (i32, i32, i32) {
    %c0_i32 = arith.constant 0 : i32
    %c0_i32_0 = arith.constant 0 : i32
    %c0_i32_1 = arith.constant 0 : i32
    %c0_i32_2 = arith.constant 0 : i32
    return %c0_i32, %c0_i32_0, %c0_i32_1 : i32, i32, i32
  }
  func.func @transform_15(%arg0: i32) -> (i32, i32, i32) {
    %c0_i32 = arith.constant 0 : i32
    %c0_i32_0 = arith.constant 0 : i32
    %c0_i32_1 = arith.constant 0 : i32
    %c0_i32_2 = arith.constant 0 : i32
    return %c0_i32, %c0_i32_0, %c0_i32_1 : i32, i32, i32
  }
  func.func @transform_16(%arg0: i32) -> (i32, i32, i32) {
    %c0_i32 = arith.constant 0 : i32
    %c0_i32_0 = arith.constant 0 : i32
    %c0_i32_1 = arith.constant 0 : i32
    return %arg0, %c0_i32, %c0_i32_0 : i32, i32, i32
  }
}

</mosaic_0001>

<bundles_post_ra>
// kernel: bert_forward.1
= control target key start
LH: loop header
LB: loop body
LE: loop exit
PB: predicated region body
PF: predicated region fallthrough
CT: control target
= control target key end

     0   :  { %s3908_s0 = inlined_call_operand.vmem [shape: f32[2,8,32], index: 0, kind: input, shape index: {}]   ;;  %s3909_s1 = inlined_call_operand.vmem [shape: f32[2,1,8], index: 1, kind: input, shape index: {}]   ;;  %s3910_s2 = inlined_call_operand.vmem [shape: f32[1,32], index: 2, kind: input, shape index: {}]   ;;  %s3911_s3 = inlined_call_operand.vmem [shape: f32[1,32], index: 3, kind: input, shape index: {}]   ;;  %s3912_s4 = inlined_call_operand.vmem [shape: bf16[2,3,2,32,16], index: 4, kind: input, shape index: {}]   ;;  %s3913_s5 = inlined_call_operand.vmem [shape: f32[2,3,2,1,16], index: 5, kind: input, shape index: {}]   ;;  %s3914_s6 = inlined_call_operand.vmem [shape: bf16[2,2,16,32], index: 6, kind: input, shape index: {}]   ;;  %s3915_s7 = inlined_call_operand.vmem [shape: f32[2,1,32], index: 7, kind: input, shape index: {}]   ;;  %s3916_s8 = inlined_call_operand.vmem [shape: f32[2,1,32], index: 8, kind: input, shape index: {}]   ;;  %s3917_s9 = inlined_call_operand.vmem [shape: f32[2,1,32], index: 9, kind: input, shape index: {}]   ;;  %s3918_s10 = inlined_call_operand.vmem [shape: bf16[2,32,64], index: 10, kind: input, shape index: {}]   ;;  %s3919_s11 = inlined_call_operand.vmem [shape: f32[2,1,64], index: 11, kind: input, shape index: {}]   ;;  %s3920_s12 = inlined_call_operand.vmem [shape: bf16[2,64,32], index: 12, kind: input, shape index: {}]   ;;  %s3921_s13 = inlined_call_operand.vmem [shape: f32[2,1,32], index: 13, kind: input, shape index: {}]   ;;  %s3922_s14 = inlined_call_operand.vmem [shape: f32[2,1,32], index: 14, kind: input, shape index: {}]   ;;  %s3923_s15 = inlined_call_operand.vmem [shape: f32[2,1,32], index: 15, kind: input, shape index: {}]   ;;  %s3924_s16 = inlined_call_operand.hbm [shape: f32[2,8,32], index: 16, kind: output, shape index: {}]  }
   0x1   :  { %3929 = sst [smem:[#allocation9_spill]] %s3908_s0 }
   0x2   :  { %3930 = sst [smem:[#allocation10_spill]] %s3909_s1 }
   0x3   :  { %3931 = sst [smem:[#allocation11_spill]] %s3910_s2 }
   0x4   :  { %21 = vsyncpa [#allocation3], 0 }
   0x5   :  { %23 = vsyncpa [#allocation3 + $0x1], 0  ;;  %s3400_s21 = smov 0   ;;  %s3402_s22 = smov 0  }
   0x6   :  { %s3404_s23 = smov 0   ;;  %s3406_s24 = smov 0  }
   0x7 LB: > { %3932 = sst [smem:[#allocation5_spill]] %s3306_s23  ;;  %s3421_s25 = sadd.s32 4294967295, %s3310_s24   ;;  %s3310_s24 = sphi %s3406_s24, %s3942_s24   ;;  %s3306_s23 = sphi %s3404_s23, %s3944_s23   ;;  %s3302_s22 = sphi %s3402_s22, %s3946_s22   ;;  %s3298_s21 = sphi %s3400_s21, %s3945_s21  }
   0x8   : > { %s2666_s26 = sadd.s32 4294967294, %s3310_s24   ;;  %s3425_s27 = sadd.s32 1, %s3310_s24  }
   0x9   : > { %3933 = sst [smem:[#allocation6_spill]] %s3425_s27  ;;  %s382_s28 = sadd.s32 1, %s3306_s23 }
   0xa   : > { %s379_s29 = ssub.s32 %s3310_s24, %s3425_s27  ;;  %p392_p0 = scmp.ne.s32.totalorder %s3306_s23, %s3302_s22 }
   0xb   : > { %p380_p1 = scmp.eq.s32.totalorder %s379_s29, 0  ;;  %p393_p2 = scmp.eq.s32.totalorder %s3421_s25, 1 }
   0xc   : > { %p398_p3 = scmp.ne.s32.totalorder %s3302_s22, %s3298_s21  ;;  %p399_p4 = scmp.eq.s32.totalorder %s2666_s26, 1 }
   0xd   : > { %s3436_s30 = scalar_select %p380_p1, %s3306_s23, %s382_s28  }
   0xe   : > { %p3438_p5 = por %p393_p2, %p392_p0  ;;  %p3442_p6 = por %p399_p4, %p398_p3 }
   0xf   : > { %3934 = sst [smem:[#allocation7_spill]] %s3436_s30  ;;  %p2669_p7 = scmp.ge.s32.totalorder %s3310_s24, 1 }
  0x10   : > { %s3936_s17 = scalar_select %p3442_p6, 1, 0 }
  0x11   : > { %p472_p8 = scmp.lt.s32.totalorder %s3310_s24, 3 }
  0x12   : > { %3937 = sst [smem:[#allocation8_spill]] %s3936_s17 }
  0x13   : > { %p473_p9 = pnand %p2669_p7, %p472_p8 }
  0x14   : > { %p524_p10 = scmp.lt.s32.totalorder (!%p473_p9), %s3421_s25, 1  ;;  %vm536_vm0 = vcmask (!%p473_p9), 261120   ;;  %s3938_s28 = sld [smem:[#allocation9_spill]] (!%p473_p9)  ;;  %v3178_v7 = vld [vmem:[%s3912_s4] sm:$0xff] (!%p473_p9)   ;;  %v3312_v9 = vmov (!%p473_p9), 0.0   ;;  %v3180_v10 = vld [vmem:[%s3912_s4 + $0x8] sm:$0xff] (!%p473_p9)  }
  0x15   : > { %476 = sbr.rel (%p473_p9) target bundleno = 6426 (0x191a), region = 84  ;;  %v3179_v8 = vld [vmem:[%s3912_s4 + $0x40] sm:$0xff] (!%p473_p9)   ;;  %2933 = vmatprep.subr.bf16.mxu1 (!%p473_p9), %v3312_v9  ;;  %2949 = vmatprep.subr.bf16.mxu0 (!%p473_p9), %v3312_v9  ;;  %v3181_v11 = vld [vmem:[%s3912_s4 + $0x48] sm:$0xff] (!%p473_p9)   ;;  %vm3313_vm1 = vmmov (!%p473_p9), 0   ;;  %s3939_s2 = sld [smem:[#allocation11_spill]] (!%p473_p9)  ;;  %v3183_v22 = vld [vmem:[%s3912_s4 + $0x10] sm:$0xff] (!%p473_p9)  }
  0x16   : > { %2934 = vmatpush3.bf16.msra.mxu1 (!%p473_p9), %v3178_v7  ;;  %2950 = vmatpush3.bf16.msra.mxu0 (!%p473_p9), %v3179_v8  ;;  %v2673_v18 = vld [vmem:[%s3911_s3] ss:$0 sm:$0xff] (!%p473_p9)  ;;  %v3184_v24 = vld [vmem:[%s3912_s4 + $0x28] sm:$0xff] (!%p473_p9)   ;;  %v3185_v25 = vld [vmem:[%s3912_s4 + $0x18] sm:$0xff] (!%p473_p9)   ;;  %vm762_vm2 = vcmask (!%p473_p9), 130048   ;;  %vm864_vm3 = vcmask (!%p473_p9), 1043456  }
  0x17   : > { %2935 = vmatprep.subr.bf16.mxu1 (!%p473_p9), %v3312_v9  ;;  %2951 = vmatprep.subr.bf16.mxu0 (!%p473_p9), %v3312_v9  ;;  %v3182_v21 = vld [vmem:[%s3912_s4 + $0x20] sm:$0xff] (!%p473_p9)   ;;  %v3186_v26 = vld [vmem:[%s3912_s4 + $0x50] sm:$0xff] (!%p473_p9)   ;;  %v3187_v27 = vld [vmem:[%s3912_s4 + $0x58] sm:$0xff] (!%p473_p9)   ;;  %s3940_s1 = sld [smem:[#allocation10_spill]] (!%p473_p9)  ;;  %vm847_vm4 = vcmask (!%p473_p9), 64512   ;;  %vm1499_vm5 = vcmask (!%p473_p9), 523264  }
  0x18   : > { %2937 = vmatprep.mubr.msk.bf16.mxu1 (!%p473_p9), %vm3313_vm1, %v3312_v9  ;;  %2953 = vmatprep.mubr.msk.bf16.mxu0 (!%p473_p9), %vm3313_vm1, %v3312_v9  ;;  %v2692_v34 = vld [vmem:[%s3913_s5 + $0x4] ss:$0 sm:$0xff] (!%p473_p9)  ;;  %v2683_v38 = vld [vmem:[%s3913_s5 + $0x2] ss:$0 sm:$0xff] (!%p473_p9)  ;;  %v2674_v41 = vld [vmem:[%s3913_s5] ss:$0 sm:$0xff] (!%p473_p9) }
  0x19   : > { %v2723_v52 = vld [vmem:[%s3913_s5 + $0x5] ss:$0 sm:$0xff] (!%p473_p9) }
  0x1a   : > { %2936 = vmatpush3.bf16.msra.mxu1 (!%p473_p9), %v3180_v10  ;;  %2952 = vmatpush3.bf16.msra.mxu0 (!%p473_p9), %v3181_v11  ;;  %v3188_v11 = vld [vmem:[%s3912_s4 + $0x30] sm:$0xff] (!%p473_p9)  }
  0x1b   : > { %2941 = vmatprep.subr.bf16.mxu1 (!%p473_p9), %v3312_v9  ;;  %2968 = vmatprep.subr.bf16.mxu0 (!%p473_p9), %v3312_v9  ;;  %v2672_v16 = vld [vmem:[%s3939_s2] ss:$0 sm:$0xff] (!%p473_p9) }
  0x1c   : > { %s3450_s18 = scalar_select %p524_p10, %s3421_s25, 1 }
  0x1e   : > { %s2671_s19 = sshll.u32 %s3450_s18, 3  ;;  %s530_s30 = scalar_lea.vmem %s3940_s1, %s3450_s18 }
  0x1f   : > { %s527_s29 = scalar_lea.vmem %s3938_s28, %s2671_s19  ;;  %v3563_v60 = vld [vmem:[%s530_s30] ss:$0 sm:$0xff]  ;;  %s521_s18 = sand.u32 1, %s3302_s22  }
  0x20   : > { %v532_v0 = vld [vmem:[%s527_s29] sm:$0xff]  ;;  %s2670_s27 = sshll.u32 %s521_s18, 3  ;;  %s2854_s19 = sshll.u32 %s3421_s25, 7 }
  0x21   : > { %v537_v1 = vsel %vm536_vm0, %v532_v0, 0.0  ;;  %s523_s20 = scalar_lea.vmem [#allocation2], %s2670_s27  ;;  %s3865_s2 = scalar_lea.hbm %s3924_s16, %s2854_s19 }
  0x22   : > { %538 = vadd.xlane.f32.xlu0 %v537_v1  ;;  %s2598_s23 = sshll.u32 %s523_s20, 4  ;;  %s2585_s17 = scalar_lea.sflag [#allocation3], %s521_s18  ;;  %s3867_s23 = int_to_ptr.vmem [resolvable:$true] %s2598_s23 }
  0x23   : > { %s3248_s26 = scalar_lea.vmem %s3867_s23, 128  ;;  %s3314_s25 = smov [#allocation2]  }
  0x24   : > { %p3249_p11 = scmp.ne.s32.totalorder %s3867_s23, %s3248_s26  ;;  %s3252_s27 = sshll.u32 %s3314_s25, 4  ;;  %s3253_s27 = int_to_ptr.vmem [resolvable:$false] %s3252_s27 }
  0x25   : > { %s3254_s28 = scalar_lea.vmem %s3253_s27, 256  ;;  %p3255_p0 = scmp.lt.s32.totalorder %s3867_s23, %s3253_s27 }
  0x26   : > { %p3250_p12 = pnand %p3249_p11, %p3438_p5  ;;  %p3256_p1 = scmp.lt.s32.totalorder %s3254_s28, %s3248_s26 }
  0x28   : > { %p3251_p13 = pneg %p3250_p12  ;;  %p3257_p2 = por %p3256_p1, %p3255_p0 }
  0x2a   : > { %p3258_p3 = pnand %p3257_p2, %p3251_p13 }
  0xaf   : > { %v539_v2 = vpop.xlane.xlu0 %538 }
  0xb0   : > { %v541_v3 = vmul.f32 0.03125, %v539_v2 }
  0xb2   : > { %v542_v4 = vsub.f32 %v532_v0, %v541_v3 }
  0xb4   : > { %v543_v5 = vmul.f32 %v542_v4, %v542_v4 }
  0xb6   : > { %v544_v6 = vsel %vm536_vm0, %v543_v5, 0.0 }
  0xb7   : > { %545 = vadd.xlane.f32.xlu0 %v544_v6 }
 0x144   : > { %v546_v12 = vpop.xlane.xlu0 %545 }
 0x145   : > { %v547_v13 = vmul.f32 0.03125, %v546_v12 }
 0x147   : > { %v548_v14 = vadd.f32 1e-12, %v547_v13  ;;  %v3189_v13 = vld [vmem:[%s3912_s4 + $0x38] sm:$0xff]  }
 0x149   : > { %3218 = vrsqrt.f32 %v548_v14 }
 0x153   : > { %v3219_v15 = vpop.eup %3218 }
 0x154   : > { %v550_v17 = vmul.f32 %v3219_v15, %v542_v4 }
 0x156   : > { %v557_v19 = vmul.f32 %v2672_v16, %v550_v17 }
 0x158   : > { %v3486_v20 = vadd.f32 %v2673_v18, %v557_v19  ;;  %v2714_v18 = vld [vmem:[%s3913_s5 + $0x3] ss:$0 sm:$0xff] }
 0x15a   : > { %v3496_v23 = vpack.c.bf16 %v3486_v20, %v3486_v20 }
 0x15c   : > { %2938 = vmatmul.mubr.msk.bf16.vlgmr.msra.gmra.mrb[0].mxu1 %vm536_vm0, %v3496_v23  ;;  %2954 = vmatmul.mubr.msk.bf16.vlgmr.msra.gmra.mrb[0].mxu0 %vm536_vm0, %v3496_v23 }
 0x15d   : > { %2942 = vmatpush3.bf16.msra.mxu1 %v3182_v21  ;;  %2969 = vmatpush3.bf16.msra.mxu0 %v3183_v22  ;;  %v2705_v21 = vld [vmem:[%s3913_s5 + $0x1] ss:$0 sm:$0xff] }
 0x15e   : > { %2943 = vmatprep.subr.bf16.mxu1 %v3312_v9  ;;  %2970 = vmatprep.subr.bf16.mxu0 %v3312_v9 }
 0x15f   : > { %2945 = vmatprep.mubr.msk.bf16.mxu1 %vm3313_vm1, %v3312_v9  ;;  %2972 = vmatprep.mubr.msk.bf16.mxu0 %vm3313_vm1, %v3312_v9 }
 0x161   : > { %2944 = vmatpush3.bf16.msra.mxu1 %v3184_v24  ;;  %2971 = vmatpush3.bf16.msra.mxu0 %v3185_v25 }
 0x162   : > { %2984 = vmatprep.subr.bf16.mxu0 %v3312_v9  ;;  %2957 = vmatprep.subr.mxu1 %v3312_v9 }
 0x164   : > { %2946 = vmatmul.mubr.msk.bf16.vlgmr.msra.gmra.mrb[4].mxu1 %vm536_vm0, %v3496_v23  ;;  %2973 = vmatmul.mubr.msk.bf16.vlgmr.msra.gmra.mrb[4].mxu0 %vm536_vm0, %v3496_v23 }
 0x165   : > { %2985 = vmatpush3.bf16.msra.mxu0 %v3186_v26  ;;  %2988 = vmatprep.mubr.msk.bf16.mxu0 %vm3313_vm1, %v3312_v9 }
 0x166   : > { %2986 = vmatprep.subr.bf16.mxu0 %v3312_v9  ;;  %2959 = vmatprep.mubr.msk.f32.mxu1 %vm3313_vm1, %v3312_v9 }
 0x169   : > { %2987 = vmatpush3.bf16.msra.mxu0 %v3187_v27 }
 0x16a   : > { %2997 = vmatprep.subr.bf16.mxu0 %v3312_v9 }
 0x16c   : > { %2989 = vmatmul.mubr.msk.bf16.vlgmr.msra.gmra.mrb[8].mxu0 %vm536_vm0, %v3496_v23 }
 0x16d   : > { %2999 = vmatprep.mubr.msk.bf16.mxu0 %vm3313_vm1, %v3312_v9 }
 0x22f   : > { %v626_v28 = vpop.f32.mrb[0].mxu1  ;;  %v756_v29 = vpop.f32.mrb[0].mxu0 }
 0x230   : > { %v2939_v30 = vpop.f32.mrb[1].mxu1  ;;  %v2955_v31 = vpop.f32.mrb[1].mxu0  ;;  %v757_v37 = vadd.f32 %v2692_v34, %v756_v29  ;;  %v627_v50 = vadd.f32 %v2674_v41, %v626_v28 }
 0x231   : > { %v629_v32 = vpop.f32.mrb[2].mxu1  ;;  %v759_v33 = vpop.f32.mrb[2].mxu0 }
 0x232   : > { %v2940_v35 = vpop.f32.mrb[3].mxu1  ;;  %v2956_v36 = vpop.f32.mrb[3].mxu0  ;;  %v860_v45 = vpack.c.bf16 %v757_v37, %v757_v37 }
 0x234   : > { %v866_v51 = vsel %vm864_vm3, %v860_v45, 0 }
 0x237   : > { %v691_v39 = vpop.f32.mrb[4].mxu1  ;;  %v3542_v40 = vpop.f32.mrb[4].mxu0 }
 0x238   : > { %v692_v42 = vadd.f32 %v2683_v38, %v691_v39  ;;  %v2947_v43 = vpop.f32.mrb[5].mxu1  ;;  %v2974_v44 = vpop.f32.mrb[5].mxu0  ;;  %v971_v26 = vadd.f32 %v2705_v21, %v3542_v40  ;;  %v3190_v40 = vld [vmem:[%s3914_s6] sm:$0xff]  }
 0x239   : > { %v694_v46 = vpop.f32.mrb[6].mxu1  ;;  %v973_v47 = vpop.f32.mrb[6].mxu0  ;;  %v3191_v43 = vld [vmem:[%s3914_s6 + $0x8] sm:$0xff]   ;;  %v2739_v21 = vld [vmem:[%s3919_s11] ss:$0 sm:$0xff] }
 0x23a   : > { %v2948_v48 = vpop.f32.mrb[7].mxu1  ;;  %2958 = vmatpush3.xpose.msk.msra.mxu1 %vm762_vm2, %v692_v42  ;;  %v2975_v49 = vpop.f32.mrb[7].mxu0 }
 0x23b   : > { %2962 = vmatprep.subr.bf16.mxu1 %v3312_v9 }
 0x23d   : > { %2960 = vmatmul.mubr.msk.f32.vlgmr.msra.gmra.mrb[8].mxu1 %vm762_vm2, %v627_v50 }
 0x23e   : > { %2963 = vmatpush3.bf16.msra.mxu1 %v866_v51  ;;  %2964 = vmatprep.mubr.msk.bf16.mxu1 %vm3313_vm1, %v3312_v9 }
 0x23f   : > { %v1100_v53 = vpop.f32.mrb[8].mxu0  ;;  %2976 = vmatprep.subr.bf16.mxu1 %v3312_v9 }
 0x240   : > { %v1101_v54 = vadd.f32 %v2723_v52, %v1100_v53  ;;  %v2990_v55 = vpop.f32.mrb[9].mxu0 }
 0x241   : > { %v1103_v56 = vpop.f32.mrb[10].mxu0 }
 0x242   : > { %v1196_v57 = vpack.c.bf16 %v1101_v54, %v1101_v54  ;;  %v2991_v58 = vpop.f32.mrb[11].mxu0  ;;  %v2736_v54 = vld [vmem:[%s3915_s7] ss:$0 sm:$0xff] }
 0x244   : > { %v1201_v59 = vsel %vm864_vm3, %v1196_v57, 0 }
 0x245   : > { %2998 = vmatpush3.bf16.msra.mxu0 %v1201_v59 }
 0x246   : > { %3009 = vmatprep.subr.bf16.mxu0 %v3312_v9 }
 0x310   : > { %v835_v61 = vpop.f32.mrb[8].mxu1 }
 0x311   : > { %v839_v62 = vmul.f32 0.25, %v835_v61  ;;  %v2961_v63 = vpop.f32.mrb[9].mxu1 }
 0x313   : > { %v846_v0 = vadd.f32 %v3563_v60, %v839_v62 }
 0x315   : > { %v848_v1 = vsel %vm847_vm4, %v846_v0, -inf }
 0x316   : > { %849 = vmax.xlane.f32.xlu1 %v848_v1 }
 0x3a3   : > { %v850_v2 = vpop.xlane.xlu1 %849 }
 0x3a4   : > { %v851_v3 = vsub.f32 %v846_v0, %v850_v2 }
 0x3a6   : > { %v852_v4 = vmul.f32 1.442695, %v851_v3 }
 0x3a8   : > { %3220 = vpow2.f32 %v852_v4  ;;  %v3192_v4 = vld [vmem:[%s3918_s10] sm:$0xff]  }
 0x3b2   : > { %v3221_v5 = vpop.eup %3220 }
 0x3b3   : > { %v854_v6 = vsel %vm847_vm4, %v3221_v5, 0.0 }
 0x3b4   : > { %855 = vadd.xlane.f32.xlu1 %v854_v6 }
 0x441   : > { %v856_v7 = vpop.xlane.xlu1 %855 }
 0x442   : > { %3222 = vrcp.f32 %v856_v7 }
 0x44c   : > { %v3223_v8 = vpop.eup %3222 }
 0x44d   : > { %v858_v10 = vmul.f32 %v3223_v8, %v3221_v5 }
 0x44f   : > { %v859_v12 = vpack.c.bf16 %v858_v10, %v858_v10  ;;  %v2737_v10 = vld [vmem:[%s3916_s8] ss:$0 sm:$0xff] }
 0x451   : > { %2965 = vmatmul.mubr.msk.bf16.vlgmr.msra.gmra.mrb[12].mxu1 %vm847_vm4, %v859_v12  ;;  %v2738_v12 = vld [vmem:[%s3917_s9] ss:$0 sm:$0xff] }
 0x452   : > { %2977 = vmatpush3.bf16.msra.mxu1 %v3188_v11  ;;  %2980 = vmatprep.mubr.msk.bf16.mxu1 %vm3313_vm1, %v3312_v9 }
 0x453   : > { %2978 = vmatprep.subr.bf16.mxu1 %v3312_v9 }
 0x456   : > { %2979 = vmatpush3.bf16.msra.mxu1 %v3189_v13 }
 0x457   : > { %2992 = vmatprep.subr.mxu1 %v3312_v9 }
 0x459   : > { %2981 = vmatmul.mubr.msk.bf16.vlgmr.msra.gmra.mrb[16].mxu1 %vm536_vm0, %v3496_v23 }
 0x45a   : > { %2994 = vmatprep.mubr.msk.f32.mxu1 %vm3313_vm1, %v3312_v9 }
 0x524   : > { %v902_v14 = vpop.f32.mrb[12].mxu1 }
 0x525   : > { %v2966_v15 = vpop.f32.mrb[13].mxu1  ;;  %v908_v42 = vpack.c.bf16 %v902_v14, %v902_v14 }
 0x526   : > { %v905_v16 = vpop.f32.mrb[14].mxu1 }
 0x527   : > { %v2967_v17 = vpop.f32.mrb[15].mxu1  ;;  %v3194_v16 = vld [vmem:[%s3920_s12] sm:$0xff]  }
 0x528   : > { %v3195_v17 = vld [vmem:[%s3920_s12 + $0x8] sm:$0xff]  }
 0x52c   : > { %v1035_v19 = vpop.f32.mrb[16].mxu1 }
 0x52d   : > { %v1036_v22 = vadd.f32 %v2714_v18, %v1035_v19  ;;  %v2982_v24 = vpop.f32.mrb[17].mxu1  ;;  %v3196_v18 = vld [vmem:[%s3920_s12 + $0x10] sm:$0xff]   ;;  %v3197_v19 = vld [vmem:[%s3920_s12 + $0x18] sm:$0xff]  }
 0x52e   : > { %v1038_v25 = vpop.f32.mrb[18].mxu1 }
 0x52f   : > { %v2983_v23 = vpop.f32.mrb[19].mxu1  ;;  %2993 = vmatpush3.xpose.msk.msra.mxu1 %vm762_vm2, %v1036_v22 }
 0x530   : > { %3003 = vmatprep.subr.bf16.mxu1 %v3312_v9 }
 0x532   : > { %2995 = vmatmul.mubr.msk.f32.vlgmr.msra.gmra.mrb[10].mxu1 %vm762_vm2, %v971_v26 }
 0x533   : > { %3005 = vmatprep.mubr.msk.bf16.mxu1 %vm3313_vm1, %v3312_v9  ;;  %3004 = vmatpush3.bf16.msra.mxu1 %v3191_v43 }
 0x534   : > { %3015 = vmatprep.subr.bf16.mxu1 %v3312_v9 }
 0x605   : > { %v1178_v27 = vpop.f32.mrb[10].mxu1 }
 0x606   : > { %v1182_v28 = vmul.f32 0.25, %v1178_v27  ;;  %v2996_v29 = vpop.f32.mrb[11].mxu1 }
 0x608   : > { %v1183_v30 = vadd.f32 %v3563_v60, %v1182_v28 }
 0x60a   : > { %v1184_v31 = vsel %vm847_vm4, %v1183_v30, -inf }
 0x60b   : > { %1185 = vmax.xlane.f32.xlu0 %v1184_v31 }
 0x698   : > { %v1186_v32 = vpop.xlane.xlu0 %1185 }
 0x699   : > { %v1187_v33 = vsub.f32 %v1183_v30, %v1186_v32 }
 0x69b   : > { %v1188_v34 = vmul.f32 1.442695, %v1187_v33 }
 0x69d   : > { %3224 = vpow2.f32 %v1188_v34 }
 0x6a7   : > { %v3225_v35 = vpop.eup %3224 }
 0x6a8   : > { %v1190_v36 = vsel %vm847_vm4, %v3225_v35, 0.0 }
 0x6a9   : > { %1191 = vadd.xlane.f32.xlu1 %v1190_v36 }
 0x736   : > { %v1192_v37 = vpop.xlane.xlu1 %1191 }
 0x737   : > { %3226 = vrcp.f32 %v1192_v37  ;;  %v2743_v37 = vld [vmem:[%s3921_s13] ss:$0 sm:$0xff] }
 0x741   : > { %v3227_v38 = vpop.eup %3226 }
 0x742   : > { %v1194_v39 = vmul.f32 %v3227_v38, %v3225_v35 }
 0x744   : > { %v1195_v41 = vpack.c.bf16 %v1194_v39, %v1194_v39 }
 0x746   : > { %3000 = vmatmul.mubr.msk.bf16.vlgmr.msra.gmra.mrb[12].mxu0 %vm847_vm4, %v1195_v41 }
 0x747   : > { %3010 = vmatpush3.bf16.msra.mxu0 %v3190_v40  ;;  %3011 = vmatprep.mubr.msk.bf16.mxu0 %vm3313_vm1, %v3312_v9 }
 0x748   : > { %3023 = vmatprep.subr.bf16.mxu0 %v3312_v9 }
 0x74e   : > { %3012 = vmatmul.mubr.msk.bf16.vlgmr.msra.gmra.mrb[16].mxu0 %vm762_vm2, %v908_v42 }
 0x74f   : > { %3031 = vmatprep.mubr.msk.bf16.mxu0 %vm3313_vm1, %v3312_v9  ;;  %3024 = vmatpush3.bf16.msra.mxu0 %v3194_v16 }
 0x750   : > { %3025 = vmatprep.subr.bf16.mxu0 %v3312_v9 }
 0x753   : > { %3026 = vmatpush3.bf16.msra.mxu0 %v3195_v17  ;;  %v2765_v17 = vld [vmem:[%s3913_s5 + $0x8] ss:$0 sm:$0xff] }
 0x754   : > { %3027 = vmatprep.subr.bf16.mxu0 %v3312_v9 }
 0x757   : > { %3028 = vmatpush3.bf16.msra.mxu0 %v3196_v18 }
 0x758   : > { %3029 = vmatprep.subr.bf16.mxu0 %v3312_v9 }
 0x75b   : > { %3030 = vmatpush3.bf16.msra.mxu0 %v3197_v19 }
 0x75c   : > { %3051 = vmatprep.subr.bf16.mxu0 %v3312_v9 }
 0x819   : > { %v1237_v44 = vpop.f32.mrb[12].mxu0 }
 0x81a   : > { %v1243_v45 = vpack.c.bf16 %v1237_v44, %v1237_v44  ;;  %v3001_v46 = vpop.f32.mrb[13].mxu0 }
 0x81b   : > { %v1240_v47 = vpop.f32.mrb[14].mxu0 }
 0x81c   : > { %v3002_v48 = vpop.f32.mrb[15].mxu0  ;;  %3006 = vmatmul.mubr.msk.bf16.vlgmr.msra.gmra.mrb[20].mxu1 %vm762_vm2, %v1243_v45 }
 0x81d   : > { %3019 = vmatprep.mubr.msk.bf16.mxu1 %vm3313_vm1, %v3312_v9  ;;  %3016 = vmatpush3.bf16.msra.mxu1 %v3192_v4  ;;  %v3205_v4 = vld [vmem:[%s3912_s4 + $0x78] sm:$0xff]  }
 0x81e   : > { %3017 = vmatprep.subr.bf16.mxu1 %v3312_v9 }
 0x821   : > { %v1339_v49 = vpop.f32.mrb[16].mxu0 }
 0x822   : > { %v3013_v50 = vpop.f32.mrb[17].mxu0 }
 0x823   : > { %v1342_v51 = vpop.f32.mrb[18].mxu0  ;;  %v3198_v50 = vld [vmem:[%s3912_s4 + $0x60] sm:$0xff]  }
 0x824   : > { %v3014_v52 = vpop.f32.mrb[19].mxu0  ;;  %v3199_v51 = vld [vmem:[%s3912_s4 + $0xa0] sm:$0xff]  }
 0x825   : > { %v3200_v52 = vld [vmem:[%s3912_s4 + $0x68] sm:$0xff]  }
 0x8ef   : > { %v1290_v53 = vpop.f32.mrb[20].mxu1 }
 0x8f0   : > { %v1340_v55 = vadd.f32 %v1339_v49, %v1290_v53  ;;  %v3007_v56 = vpop.f32.mrb[21].mxu1  ;;  %v3201_v53 = vld [vmem:[%s3912_s4 + $0xa8] sm:$0xff]  }
 0x8f1   : > { %v1293_v57 = vpop.f32.mrb[22].mxu1 }
 0x8f2   : > { %v1352_v58 = vadd.f32 %v2736_v54, %v1340_v55  ;;  %v3008_v59 = vpop.f32.mrb[23].mxu1 }
 0x8f4   : > { %v1353_v61 = vadd.f32 %v1352_v58, %v3486_v20  ;;  %v3193_v20 = vld [vmem:[%s3918_s10 + $0x8] sm:$0xff]   ;;  %v2749_v58 = vld [vmem:[%s3922_s14] ss:$0 sm:$0xff] }
 0x8f5   : > { %3018 = vmatpush3.bf16.msra.mxu1 %v3193_v20  ;;  %v3206_v20 = vld [vmem:[%s3912_s4 + $0xb0] sm:$0xff]  }
 0x8f6   : > { %v1356_v62 = vsel %vm536_vm0, %v1353_v61, 0.0  ;;  %3035 = vmatprep.subr.bf16.mxu1 %v3312_v9 }
 0x8f7   : > { %1357 = vadd.xlane.f32.xlu0 %v1356_v62 }
 0x984   : > { %v1358_v63 = vpop.xlane.xlu0 %1357 }
 0x985   : > { %v1359_v0 = vmul.f32 0.03125, %v1358_v63 }
 0x987   : > { %v1360_v1 = vsub.f32 %v1353_v61, %v1359_v0  ;;  %v2750_v61 = vld [vmem:[%s3923_s15] ss:$0 sm:$0xff] }
 0x988   : > { %v3202_v0 = vld [vmem:[%s3912_s4 + $0x80] sm:$0xff]  }
 0x989   : > { %v1361_v2 = vmul.f32 %v1360_v1, %v1360_v1 }
 0x98b   : > { %v1362_v3 = vsel %vm536_vm0, %v1361_v2, 0.0 }
 0x98c   : > { %1363 = vadd.xlane.f32.xlu1 %v1362_v3  ;;  %v3204_v3 = vld [vmem:[%s3912_s4 + $0x88] sm:$0xff]  }
 0xa19   : > { %v1364_v5 = vpop.xlane.xlu1 %1363 }
 0xa1a   : > { %v1365_v6 = vmul.f32 0.03125, %v1364_v5  ;;  %v3207_v5 = vld [vmem:[%s3912_s4 + $0xb8] sm:$0xff]  }
 0xa1c   : > { %v1366_v7 = vadd.f32 1e-12, %v1365_v6 }
 0xa1e   : > { %3228 = vrsqrt.f32 %v1366_v7 }
 0xa28   : > { %v3229_v8 = vpop.eup %3228 }
 0xa29   : > { %v1368_v11 = vmul.f32 %v3229_v8, %v1360_v1  ;;  %v3203_v1 = vld [vmem:[%s3912_s4 + $0x70] sm:$0xff]  }
 0xa2b   : > { %v1375_v13 = vmul.f32 %v2737_v10, %v1368_v11 }
 0xa2d   : > { %v1382_v14 = vadd.f32 %v2738_v12, %v1375_v13  ;;  %v2774_v13 = vld [vmem:[%s3913_s5 + $0xa] ss:$0 sm:$0xff] }
 0xa2f   : > { %v1383_v15 = vpack.c.bf16 %v1382_v14, %v1382_v14 }
 0xa31   : > { %3020 = vmatmul.mubr.msk.bf16.vlgmr.msra.gmra.mrb[24].mxu1 %vm536_vm0, %v1383_v15 }
 0xa32   : > { %3039 = vmatprep.mubr.msk.bf16.mxu1 %vm3313_vm1, %v3312_v9  ;;  %3036 = vmatpush3.bf16.msra.mxu1 %v3198_v50 }
 0xa33   : > { %3037 = vmatprep.subr.bf16.mxu1 %v3312_v9 }
 0xa36   : > { %3038 = vmatpush3.bf16.msra.mxu1 %v3200_v52 }
 0xa37   : > { %3043 = vmatprep.subr.bf16.mxu1 %v3312_v9 }
 0xb04   : > { %v1444_v22 = vpop.f32.mrb[24].mxu1 }
 0xb05   : > { %v1445_v24 = vadd.f32 %v2739_v21, %v1444_v22  ;;  %v3021_v25 = vpop.f32.mrb[25].mxu1  ;;  %v2756_v21 = vld [vmem:[%s3913_s5 + $0x6] ss:$0 sm:$0xff] }
 0xb06   : > { %v1447_v23 = vpop.f32.mrb[26].mxu1 }
 0xb07   : > { %v1451_v26 = vmul.f32 0.044715, %v1445_v24  ;;  %v3022_v27 = vpop.f32.mrb[27].mxu1  ;;  %v1450_v33 = vmul.f32 0.5, %v1445_v24 }
 0xb09   : > { %v1452_v28 = vmul.f32 %v1451_v26, %v1445_v24 }
 0xb0b   : > { %v1453_v29 = vmul.f32 %v1452_v28, %v1445_v24 }
 0xb0d   : > { %v1454_v30 = vadd.f32 %v1453_v29, %v1445_v24 }
 0xb0f   : > { %v1455_v31 = vmul.f32 0.7978846, %v1454_v30 }
 0xb11   : > { %3230 = vtanh.f32 %v1455_v31 }
 0xb1b   : > { %v3231_v32 = vpop.eup %3230 }
 0xb1c   : > { %v1457_v34 = vadd.f32 1.0, %v3231_v32  ;;  %v2806_v32 = vld [vmem:[%s3913_s5 + $0xb] ss:$0 sm:$0xff] }
 0xb1e   : > { %v1458_v35 = vmul.f32 %v1457_v34, %v1450_v33 }
 0xb20   : > { %v1459_v36 = vpack.c.bf16 %v1458_v35, %v1458_v35 }
 0xb22   : > { %3032 = vmatmul.mubr.msk.bf16.vlgmr.msra.gmra.mrb[20].mxu0 %vm1499_vm5, %v1459_v36 }
 0xb23   : > { %3055 = vmatprep.mubr.msk.bf16.mxu0 %vm3313_vm1, %v3312_v9  ;;  %3052 = vmatpush3.bf16.msra.mxu0 %v3199_v51 }
 0xb24   : > { %3053 = vmatprep.subr.bf16.mxu0 %v3312_v9 }
 0xb27   : > { %3054 = vmatpush3.bf16.msra.mxu0 %v3201_v53  ;;  %v3208_v53 = vld [vmem:[%s3912_s4 + $0x90] sm:$0xff]  }
 0xb28   : > { %3070 = vmatprep.subr.bf16.mxu0 %v3312_v9 }
 0xbf5   : > { %v1537_v38 = vpop.f32.mrb[20].mxu0 }
 0xbf6   : > { %v1538_v39 = vadd.f32 %v2743_v37, %v1537_v38  ;;  %v3033_v40 = vpop.f32.mrb[21].mxu0 }
 0xbf7   : > { %v1540_v41 = vpop.f32.mrb[22].mxu0 }
 0xbf8   : > { %v3034_v42 = vpop.f32.mrb[23].mxu0  ;;  %v1543_v43 = vadd.f32 %v1538_v39, %v1382_v14 }
 0xbfa   : > { %v1546_v44 = vsel %vm536_vm0, %v1543_v43, 0.0 }
 0xbfb   : > { %1547 = vadd.xlane.f32.xlu0 %v1546_v44 }
 0xc88   : > { %v1548_v45 = vpop.xlane.xlu0 %1547 }
 0xc89   : > { %v1549_v46 = vmul.f32 0.03125, %v1548_v45 }
 0xc8b   : > { %v1550_v47 = vsub.f32 %v1543_v43, %v1549_v46 }
 0xc8d   : > { %v1551_v48 = vmul.f32 %v1550_v47, %v1550_v47 }
 0xc8f   : > { %v1552_v49 = vsel %vm536_vm0, %v1551_v48, 0.0 }
 0xc90   : > { %1553 = vadd.xlane.f32.xlu1 %v1552_v49 }
 0xd1d   : > { %v1554_v54 = vpop.xlane.xlu1 %1553 }
 0xd1e   : > { %v1555_v55 = vmul.f32 0.03125, %v1554_v54 }
 0xd20   : > { %v1556_v56 = vadd.f32 1e-12, %v1555_v55  ;;  %v3209_v55 = vld [vmem:[%s3912_s4 + $0x98] sm:$0xff]  }
 0xd22   : > { %3232 = vrsqrt.f32 %v1556_v56 }
 0xd2c   : > { %v3233_v57 = vpop.eup %3232 }
 0xd2d   : > { %v1558_v59 = vmul.f32 %v3233_v57, %v1550_v47 }
 0xd2f   : > { %v1565_v62 = vmul.f32 %v2749_v58, %v1558_v59 }
 0xd31   : > { %v3687_v63 = vadd.f32 %v2750_v61, %v1565_v62  ;;  %v2797_v61 = vld [vmem:[%s3913_s5 + $0x9] ss:$0 sm:$0xff] }
 0xd33   : > { %v3697_v2 = vpack.c.bf16 %v3687_v63, %v3687_v63 }
 0xd35   : > { %3040 = vmatmul.mubr.msk.bf16.vlgmr.msra.gmra.mrb[28].mxu1 %vm536_vm0, %v3697_v2  ;;  %3056 = vmatmul.mubr.msk.bf16.vlgmr.msra.gmra.mrb[24].mxu0 %vm536_vm0, %v3697_v2 }
 0xd36   : > { %3044 = vmatpush3.bf16.msra.mxu1 %v3202_v0  ;;  %3071 = vmatpush3.bf16.msra.mxu0 %v3203_v1  ;;  %v2788_v0 = vld [vmem:[%s3913_s5 + $0x7] ss:$0 sm:$0xff] }
 0xd37   : > { %3045 = vmatprep.subr.bf16.mxu1 %v3312_v9  ;;  %3072 = vmatprep.subr.bf16.mxu0 %v3312_v9 }
 0xd38   : > { %3047 = vmatprep.mubr.msk.bf16.mxu1 %vm3313_vm1, %v3312_v9  ;;  %3074 = vmatprep.mubr.msk.bf16.mxu0 %vm3313_vm1, %v3312_v9 }
 0xd3a   : > { %3046 = vmatpush3.bf16.msra.mxu1 %v3204_v3  ;;  %3073 = vmatpush3.bf16.msra.mxu0 %v3205_v4 }
 0xd3b   : > { %3086 = vmatprep.subr.bf16.mxu0 %v3312_v9  ;;  %3059 = vmatprep.subr.mxu1 %v3312_v9 }
 0xd3d   : > { %3048 = vmatmul.mubr.msk.bf16.vlgmr.msra.gmra.mrb[32].mxu1 %vm536_vm0, %v3697_v2  ;;  %3075 = vmatmul.mubr.msk.bf16.vlgmr.msra.gmra.mrb[28].mxu0 %vm536_vm0, %v3697_v2 }
 0xd3e   : > { %3087 = vmatpush3.bf16.msra.mxu0 %v3206_v20  ;;  %3090 = vmatprep.mubr.msk.bf16.mxu0 %vm3313_vm1, %v3312_v9 }
 0xd3f   : > { %3088 = vmatprep.subr.bf16.mxu0 %v3312_v9  ;;  %3061 = vmatprep.mubr.msk.f32.mxu1 %vm3313_vm1, %v3312_v9 }
 0xd42   : > { %3089 = vmatpush3.bf16.msra.mxu0 %v3207_v5 }
 0xd43   : > { %3099 = vmatprep.subr.bf16.mxu0 %v3312_v9 }
 0xd45   : > { %3091 = vmatmul.mubr.msk.bf16.vlgmr.msra.gmra.mrb[32].mxu0 %vm536_vm0, %v3697_v2 }
 0xd46   : > { %3101 = vmatprep.mubr.msk.bf16.mxu0 %vm3313_vm1, %v3312_v9 }
 0xe08   : > { %v1636_v6 = vpop.f32.mrb[28].mxu1  ;;  %v1766_v7 = vpop.f32.mrb[24].mxu0 }
 0xe09   : > { %v3041_v8 = vpop.f32.mrb[29].mxu1  ;;  %v3057_v10 = vpop.f32.mrb[25].mxu0  ;;  %v1767_v16 = vadd.f32 %v2774_v13, %v1766_v7  ;;  %v1637_v30 = vadd.f32 %v2756_v21, %v1636_v6 }
 0xe0a   : > { %v1639_v11 = vpop.f32.mrb[30].mxu1  ;;  %v1769_v12 = vpop.f32.mrb[26].mxu0 }
 0xe0b   : > { %v3042_v14 = vpop.f32.mrb[31].mxu1  ;;  %v3058_v15 = vpop.f32.mrb[27].mxu0  ;;  %v1862_v23 = vpack.c.bf16 %v1767_v16, %v1767_v16 }
 0xe0d   : > { %v1867_v31 = vsel %vm864_vm3, %v1862_v23, 0 }
 0xe10   : > { %v1701_v18 = vpop.f32.mrb[32].mxu1  ;;  %v3743_v19 = vpop.f32.mrb[28].mxu0 }
 0xe11   : > { %v1702_v22 = vadd.f32 %v2765_v17, %v1701_v18  ;;  %v3049_v24 = vpop.f32.mrb[33].mxu1  ;;  %v3076_v25 = vpop.f32.mrb[29].mxu0  ;;  %v1973_v20 = vadd.f32 %v2788_v0, %v3743_v19  ;;  %v3210_v19 = vld [vmem:[%s3914_s6 + $0x10] sm:$0xff]  }
 0xe12   : > { %v1704_v26 = vpop.f32.mrb[34].mxu1  ;;  %v1975_v27 = vpop.f32.mrb[30].mxu0 }
 0xe13   : > { %v3050_v28 = vpop.f32.mrb[35].mxu1  ;;  %3060 = vmatpush3.xpose.msk.msra.mxu1 %vm762_vm2, %v1702_v22  ;;  %v3077_v29 = vpop.f32.mrb[31].mxu0  ;;  %v3211_v22 = vld [vmem:[%s3914_s6 + $0x18] sm:$0xff]  }
 0xe14   : > { %3064 = vmatprep.subr.bf16.mxu1 %v3312_v9 }
 0xe16   : > { %3062 = vmatmul.mubr.msk.f32.vlgmr.msra.gmra.mrb[36].mxu1 %vm762_vm2, %v1637_v30 }
 0xe17   : > { %3065 = vmatpush3.bf16.msra.mxu1 %v1867_v31  ;;  %3066 = vmatprep.mubr.msk.bf16.mxu1 %vm3313_vm1, %v3312_v9 }
 0xe18   : > { %v2102_v33 = vpop.f32.mrb[32].mxu0  ;;  %3078 = vmatprep.subr.bf16.mxu1 %v3312_v9 }
 0xe19   : > { %v2103_v34 = vadd.f32 %v2806_v32, %v2102_v33  ;;  %v3092_v35 = vpop.f32.mrb[33].mxu0  ;;  %v2820_v33 = vld [vmem:[%s3915_s7 + $0x1] ss:$0 sm:$0xff] }
 0xe1a   : > { %v2105_v36 = vpop.f32.mrb[34].mxu0 }
 0xe1b   : > { %v2198_v37 = vpack.c.bf16 %v2103_v34, %v2103_v34  ;;  %v3093_v38 = vpop.f32.mrb[35].mxu0 }
 0xe1d   : > { %v2203_v39 = vsel %vm864_vm3, %v2198_v37, 0 }
 0xe1e   : > { %3100 = vmatpush3.bf16.msra.mxu0 %v2203_v39 }
 0xe1f   : > { %3111 = vmatprep.subr.bf16.mxu0 %v3312_v9 }
 0xee9   : > { %v1844_v40 = vpop.f32.mrb[36].mxu1 }
 0xeea   : > { %v1848_v41 = vmul.f32 0.25, %v1844_v40  ;;  %v3063_v42 = vpop.f32.mrb[37].mxu1 }
 0xeec   : > { %v1849_v43 = vadd.f32 %v3563_v60, %v1848_v41 }
 0xeee   : > { %v1850_v44 = vsel %vm847_vm4, %v1849_v43, -inf }
 0xeef   : > { %1851 = vmax.xlane.f32.xlu0 %v1850_v44 }
 0xf7c   : > { %v1852_v45 = vpop.xlane.xlu0 %1851 }
 0xf7d   : > { %v1853_v46 = vsub.f32 %v1849_v43, %v1852_v45 }
 0xf7f   : > { %v1854_v47 = vmul.f32 1.442695, %v1853_v46  ;;  %v3212_v46 = vld [vmem:[%s3918_s10 + $0x10] sm:$0xff]  }
 0xf81   : > { %3234 = vpow2.f32 %v1854_v47 }
 0xf8b   : > { %v3235_v48 = vpop.eup %3234 }
 0xf8c   : > { %v1856_v49 = vsel %vm847_vm4, %v3235_v48, 0.0 }
 0xf8d   : > { %1857 = vadd.xlane.f32.xlu1 %v1856_v49 }
0x101a   : > { %v1858_v50 = vpop.xlane.xlu1 %1857 }
0x101b   : > { %3236 = vrcp.f32 %v1858_v50 }
0x1025   : > { %v3237_v51 = vpop.eup %3236 }
0x1026   : > { %v1860_v52 = vmul.f32 %v3237_v51, %v3235_v48  ;;  %v2823_v51 = vld [vmem:[%s3916_s8 + $0x1] ss:$0 sm:$0xff] }
0x1028   : > { %v1861_v54 = vpack.c.bf16 %v1860_v52, %v1860_v52 }
0x102a   : > { %3067 = vmatmul.mubr.msk.bf16.vlgmr.msra.gmra.mrb[40].mxu1 %vm847_vm4, %v1861_v54 }
0x102b   : > { %3079 = vmatpush3.bf16.msra.mxu1 %v3208_v53  ;;  %3082 = vmatprep.mubr.msk.bf16.mxu1 %vm3313_vm1, %v3312_v9  ;;  %v2824_v53 = vld [vmem:[%s3917_s9 + $0x1] ss:$0 sm:$0xff] }
0x102c   : > { %3080 = vmatprep.subr.bf16.mxu1 %v3312_v9 }
0x102f   : > { %3081 = vmatpush3.bf16.msra.mxu1 %v3209_v55 }
0x1030   : > { %3094 = vmatprep.subr.mxu1 %v3312_v9 }
0x1032   : > { %3083 = vmatmul.mubr.msk.bf16.vlgmr.msra.gmra.mrb[44].mxu1 %vm536_vm0, %v3697_v2 }
0x1033   : > { %3096 = vmatprep.mubr.msk.f32.mxu1 %vm3313_vm1, %v3312_v9 }
0x10fd   : > { %v1903_v56 = vpop.f32.mrb[40].mxu1 }
0x10fe   : > { %v3068_v57 = vpop.f32.mrb[41].mxu1  ;;  %v1909_v21 = vpack.c.bf16 %v1903_v56, %v1903_v56 }
0x10ff   : > { %v1906_v58 = vpop.f32.mrb[42].mxu1  ;;  %v3214_v57 = vld [vmem:[%s3920_s12 + $0x20] sm:$0xff]  }
0x1100   : > { %v3069_v59 = vpop.f32.mrb[43].mxu1  ;;  %v3215_v58 = vld [vmem:[%s3920_s12 + $0x28] sm:$0xff]  }
0x1101   : > { %v3216_v59 = vld [vmem:[%s3920_s12 + $0x30] sm:$0xff]  }
0x1105   : > { %v2037_v62 = vpop.f32.mrb[44].mxu1 }
0x1106   : > { %v2038_v1 = vadd.f32 %v2797_v61, %v2037_v62  ;;  %v3084_v3 = vpop.f32.mrb[45].mxu1  ;;  %v3217_v61 = vld [vmem:[%s3920_s12 + $0x38] sm:$0xff]   ;;  %v2830_v62 = vld [vmem:[%s3919_s11 + $0x1] ss:$0 sm:$0xff] }
0x1107   : > { %v2040_v4 = vpop.f32.mrb[46].mxu1 }
0x1108   : > { %v3085_v2 = vpop.f32.mrb[47].mxu1  ;;  %3095 = vmatpush3.xpose.msk.msra.mxu1 %vm762_vm2, %v2038_v1 }
0x1109   : > { %3105 = vmatprep.subr.bf16.mxu1 %v3312_v9 }
0x110b   : > { %3097 = vmatmul.mubr.msk.f32.vlgmr.msra.gmra.mrb[38].mxu1 %vm762_vm2, %v1973_v20 }
0x110c   : > { %3107 = vmatprep.mubr.msk.bf16.mxu1 %vm3313_vm1, %v3312_v9  ;;  %3106 = vmatpush3.bf16.msra.mxu1 %v3211_v22 }
0x110d   : > { %3117 = vmatprep.subr.bf16.mxu1 %v3312_v9 }
0x11de   : > { %v2180_v5 = vpop.f32.mrb[38].mxu1 }
0x11df   : > { %v2184_v6 = vmul.f32 0.25, %v2180_v5  ;;  %v3098_v7 = vpop.f32.mrb[39].mxu1 }
0x11e1   : > { %v2185_v8 = vadd.f32 %v3563_v60, %v2184_v6 }
0x11e3   : > { %v2186_v10 = vsel %vm847_vm4, %v2185_v8, -inf }
0x11e4   : > { %2187 = vmax.xlane.f32.xlu0 %v2186_v10 }
0x1271   : > { %v2188_v11 = vpop.xlane.xlu0 %2187 }
0x1272   : > { %v2189_v12 = vsub.f32 %v2185_v8, %v2188_v11 }
0x1274   : > { %v2190_v13 = vmul.f32 1.442695, %v2189_v12 }
0x1276   : > { %3238 = vpow2.f32 %v2190_v13 }
0x1280   : > { %v3239_v14 = vpop.eup %3238 }
0x1281   : > { %v2192_v15 = vsel %vm847_vm4, %v3239_v14, 0.0 }
0x1282   : > { %2193 = vadd.xlane.f32.xlu1 %v2192_v15 }
0x130f   : > { %v2194_v16 = vpop.xlane.xlu1 %2193 }
0x1310   : > { %3240 = vrcp.f32 %v2194_v16 }
0x131a   : > { %v3241_v17 = vpop.eup %3240 }
0x131b   : > { %v2196_v18 = vmul.f32 %v3241_v17, %v3239_v14  ;;  %v2843_v14 = vld [vmem:[%s3921_s13 + $0x1] ss:$0 sm:$0xff] }
0x131d   : > { %v2197_v60 = vpack.c.bf16 %v2196_v18, %v2196_v18 }
0x131f   : > { %3102 = vmatmul.mubr.msk.bf16.vlgmr.msra.gmra.mrb[36].mxu0 %vm847_vm4, %v2197_v60 }
0x1320   : > { %3112 = vmatpush3.bf16.msra.mxu0 %v3210_v19  ;;  %3113 = vmatprep.mubr.msk.bf16.mxu0 %vm3313_vm1, %v3312_v9 }
0x1321   : > { %3125 = vmatprep.subr.bf16.mxu0 %v3312_v9 }
0x1327   : > { %3114 = vmatmul.mubr.msk.bf16.vlgmr.msra.gmra.mrb[40].mxu0 %vm762_vm2, %v1909_v21 }
0x1328   : > { %3133 = vmatprep.mubr.msk.bf16.mxu0 %vm3313_vm1, %v3312_v9  ;;  %3126 = vmatpush3.bf16.msra.mxu0 %v3214_v57 }
0x1329   : > { %3127 = vmatprep.subr.bf16.mxu0 %v3312_v9 }
0x132c   : > { %3128 = vmatpush3.bf16.msra.mxu0 %v3215_v58 }
0x132d   : > { %3129 = vmatprep.subr.bf16.mxu0 %v3312_v9 }
0x1330   : > { %3130 = vmatpush3.bf16.msra.mxu0 %v3216_v59 }
0x1331   : > { %3131 = vmatprep.subr.bf16.mxu0 %v3312_v9 }
0x1334   : > { %3132 = vmatpush3.bf16.msra.mxu0 %v3217_v61 }
0x13f2   : > { %v2239_v24 = vpop.f32.mrb[36].mxu0 }
0x13f3   : > { %v2245_v25 = vpack.c.bf16 %v2239_v24, %v2239_v24  ;;  %v3103_v23 = vpop.f32.mrb[37].mxu0 }
0x13f4   : > { %v2242_v26 = vpop.f32.mrb[38].mxu0 }
0x13f5   : > { %v3104_v27 = vpop.f32.mrb[39].mxu0  ;;  %3108 = vmatmul.mubr.msk.bf16.vlgmr.msra.gmra.mrb[48].mxu1 %vm762_vm2, %v2245_v25 }
0x13f6   : > { %3121 = vmatprep.mubr.msk.bf16.mxu1 %vm3313_vm1, %v3312_v9  ;;  %3118 = vmatpush3.bf16.msra.mxu1 %v3212_v46 }
0x13f7   : > { %3119 = vmatprep.subr.bf16.mxu1 %v3312_v9 }
0x13fa   : > { %v2341_v28 = vpop.f32.mrb[40].mxu0 }
0x13fb   : > { %v3115_v29 = vpop.f32.mrb[41].mxu0 }
0x13fc   : > { %v2344_v30 = vpop.f32.mrb[42].mxu0 }
0x13fd   : > { %v3116_v31 = vpop.f32.mrb[43].mxu0 }
0x13fe   : > { %v2851_v31 = vld [vmem:[%s3922_s14 + $0x1] ss:$0 sm:$0xff] }
0x14c8   : > { %v2292_v32 = vpop.f32.mrb[48].mxu1 }
0x14c9   : > { %v2342_v34 = vadd.f32 %v2341_v28, %v2292_v32  ;;  %v3109_v35 = vpop.f32.mrb[49].mxu1 }
0x14ca   : > { %v2295_v36 = vpop.f32.mrb[50].mxu1 }
0x14cb   : > { %v2355_v37 = vadd.f32 %v2820_v33, %v2342_v34  ;;  %v3110_v38 = vpop.f32.mrb[51].mxu1  ;;  %v2852_v33 = vld [vmem:[%s3923_s15 + $0x1] ss:$0 sm:$0xff] }
0x14cd   : > { %v2356_v39 = vadd.f32 %v2355_v37, %v3687_v63  ;;  %v3213_v63 = vld [vmem:[%s3918_s10 + $0x18] sm:$0xff]  }
0x14ce   : > { %3120 = vmatpush3.bf16.msra.mxu1 %v3213_v63 }
0x14cf   : > { %v2361_v40 = vsel %vm536_vm0, %v2356_v39, 0.0 }
0x14d0   : > { %2362 = vadd.xlane.f32.xlu0 %v2361_v40 }
0x155d   : > { %v2363_v41 = vpop.xlane.xlu0 %2362 }
0x155e   : > { %v2364_v42 = vmul.f32 0.03125, %v2363_v41 }
0x1560   : > { %v2365_v43 = vsub.f32 %v2356_v39, %v2364_v42 }
0x1562   : > { %v2366_v44 = vmul.f32 %v2365_v43, %v2365_v43 }
0x1564   : > { %v2367_v45 = vsel %vm536_vm0, %v2366_v44, 0.0 }
0x1565   : > { %2368 = vadd.xlane.f32.xlu1 %v2367_v45 }
0x15f2   : > { %v2369_v47 = vpop.xlane.xlu1 %2368 }
0x15f3   : > { %v2370_v48 = vmul.f32 0.03125, %v2369_v47 }
0x15f5   : > { %v2371_v49 = vadd.f32 1e-12, %v2370_v48 }
0x15f7   : > { %3242 = vrsqrt.f32 %v2371_v49 }
0x1601   : > { %v3243_v50 = vpop.eup %3242 }
0x1602   : > { %v2373_v52 = vmul.f32 %v3243_v50, %v2365_v43 }
0x1604   : > { %v2380_v54 = vmul.f32 %v2823_v51, %v2373_v52 }
0x1606   : > { %v2387_v55 = vadd.f32 %v2824_v53, %v2380_v54 }
0x1608   : > { %v2388_v56 = vpack.c.bf16 %v2387_v55, %v2387_v55 }
0x160a   : > { %3122 = vmatmul.mubr.msk.bf16.vlgmr.msra.gmra.mrb[52].mxu1 %vm536_vm0, %v2388_v56 }
0x16dd   : > { %v2451_v0 = vpop.f32.mrb[52].mxu1 }
0x16de   : > { %v2452_v1 = vadd.f32 %v2830_v62, %v2451_v0  ;;  %v3123_v3 = vpop.f32.mrb[53].mxu1 }
0x16df   : > { %v2454_v4 = vpop.f32.mrb[54].mxu1 }
0x16e0   : > { %v2458_v2 = vmul.f32 0.044715, %v2452_v1  ;;  %v3124_v20 = vpop.f32.mrb[55].mxu1  ;;  %v2457_v11 = vmul.f32 0.5, %v2452_v1 }
0x16e2   : > { %v2459_v5 = vmul.f32 %v2458_v2, %v2452_v1 }
0x16e4   : > { %v2460_v6 = vmul.f32 %v2459_v5, %v2452_v1 }
0x16e6   : > { %v2461_v7 = vadd.f32 %v2460_v6, %v2452_v1 }
0x16e8   : > { %v2462_v8 = vmul.f32 0.7978846, %v2461_v7 }
0x16ea   : > { %3244 = vtanh.f32 %v2462_v8 }
0x16f4   : > { %v3245_v10 = vpop.eup %3244 }
0x16f5   : > { %v2464_v12 = vadd.f32 1.0, %v3245_v10 }
0x16f7   : > { %v2465_v9 = vmul.f32 %v2464_v12, %v2457_v11 }
0x16f9   : > { %v2466_v13 = vpack.c.bf16 %v2465_v9, %v2465_v9 }
0x16fb   : > { %3134 = vmatmul.mubr.msk.bf16.vlgmr.msra.gmra.mrb[44].mxu0 %vm1499_vm5, %v2466_v13 }
0x17ce   : > { %v2545_v15 = vpop.f32.mrb[44].mxu0 }
0x17cf   : > { %v2546_v16 = vadd.f32 %v2843_v14, %v2545_v15  ;;  %v3135_v17 = vpop.f32.mrb[45].mxu0 }
0x17d0   : > { %v2548_v18 = vpop.f32.mrb[46].mxu0 }
0x17d1   : > { %v3136_v19 = vpop.f32.mrb[47].mxu0  ;;  %v2551_v60 = vadd.f32 %v2546_v16, %v2387_v55 }
0x17d3   : > { %v2556_v21 = vsel %vm536_vm0, %v2551_v60, 0.0 }
0x17d4   : > { %2557 = vadd.xlane.f32.xlu0 %v2556_v21 }
0x1861   : > { %v2558_v22 = vpop.xlane.xlu0 %2557 }
0x1862   : > { %v2559_v24 = vmul.f32 0.03125, %v2558_v22 }
0x1864   : > { %v2560_v25 = vsub.f32 %v2551_v60, %v2559_v24 }
0x1866   : > { %v2561_v23 = vmul.f32 %v2560_v25, %v2560_v25 }
0x1868   : > { %v2562_v26 = vsel %vm536_vm0, %v2561_v23, 0.0 }
0x1869   : > { %2563 = vadd.xlane.f32.xlu1 %v2562_v26 }
0x18f6   : > { %v2564_v27 = vpop.xlane.xlu1 %2563 }
0x18f7   : > { %v2565_v28 = vmul.f32 0.03125, %v2564_v27 }
0x18f9   : > { %v2566_v29 = vadd.f32 1e-12, %v2565_v28 }
0x18fb   : > { %3246 = vrsqrt.f32 %v2566_v29 }
0x1905   : > { %v3247_v30 = vpop.eup %3246 }
0x1906   : > { %v2568_v32 = vmul.f32 %v3247_v30, %v2560_v25 }
0x1908   : > { %v2575_v34 = vmul.f32 %v2851_v31, %v2568_v32 }
0x190a   : > { %v2582_v35 = vadd.f32 %v2852_v33, %v2575_v34 }
0x190c   : > { %2583 = vst.msk [vmem:[%s523_s20] sm:$0xff] %vm536_vm0, %v2582_v35 }
0x190d   : > { %3261 = shalt.err (!%p3258_p3)
}
0x190e   : > { %s3262_s1 = scalar_lea.hbm %s3865_s2, 128  ;;  %s3266_s19 = scalar_lea.hbm %s3924_s16, 256 }
0x190f   : > { %p3263_p4 = scmp.ne.s32.totalorder %s3865_s2, %s3262_s1  ;;  %p3267_p9 = scmp.lt.u32.totalorder %s3865_s2, %s3924_s16 }
0x1910   : > { %p3268_p10 = scmp.lt.u32.totalorder %s3266_s19, %s3262_s1  ;;  %p3270_p12 = scmp.lt.u32.totalorder %s3262_s1, %s3865_s2 }
0x1911   : > { %p3264_p7 = pnand %p3263_p4, %p3438_p5 }
0x1912   : > { %p3269_p11 = por %p3268_p10, %p3267_p9 }
0x1913   : > { %p3265_p8 = pneg %p3264_p7 }
0x1914   : > { %p3271_p13 = por %p3270_p12, %p3269_p11 }
0x1916   : > { %p3272_p0 = pnand %p3271_p13, %p3265_p8 }
0x1918   : > { %3275 = shalt.err (!%p3272_p0)
}
0x1919   : > { %3137 = dma.vmem_to_hbm [thread:$0]  (%p3438_p5), %s3867_s23, 128, %s3865_s2, %s2585_s17  }
0x191a PF: > { %p3143_p1 = scmp.ge.s32.totalorder %s3310_s24, 2  ;;  %s2610_s25 = sand.u32 1, %s3298_s21  }
0x191b   : > { %s2611_s27 = scalar_lea.sflag [#allocation3], %s2610_s25 }
0x191c   : > { %p3140_p2 = pnand %p3143_p1, %p3442_p6 }
0x191e   : > { %3293 = dma.done.wait (!%p3140_p2), %s2611_s27, 128  }
0x191f   : > { %3295 = vsyncadd (!%p3140_p2), %s2611_s27, 4294967168  ;;  %s3942_s24 = sld [smem:[#allocation6_spill]]  ;;  %s3943_s28 = sld [smem:[#allocation5_spill]] }
0x1920   : > { %s3944_s23 = sld [smem:[#allocation7_spill]]  ;;  %s3945_s21 = smov %s3302_s22 }
0x1925   : > { %p26_p3 = scmp.ge.s32.totalorder %s3942_s24, 4   ;;  %s3946_s22 = smov %s3943_s28 }
0x1927   :  { %28 = sbr.rel (!%p26_p3) target bundleno = 7 (0x7), region = 156 }
0x192e   :  { %2616 = vsyncpa [#allocation3], 1 }
0x192f   :  { %2618 = vsyncpa [#allocation3 + $0x1], 1 }

</bundles_post_ra>
